<compile_context>
chip_gen: v7x
topology: tpu7x:2x2x1
jax: 0.10.0
libtpu: 0.0.40
codegen_flags: <defaults>
</compile_context>

<pallas_src>
import jax
import jax.numpy as jnp
from jax.experimental import pallas as pl
from jax.experimental.pallas import tpu as pltpu


# ----------------------------------------------------------------------------
# Fused Pallas kernel: conv1+relu -> conv2+relu -> conv3+relu, all in VMEM
# ----------------------------------------------------------------------------
def _unfold_conv_relu(prev_bf16, s_ref, w_ref, b_ref):
    """relu(unfold(prev) @ W + b), with the unfold expressed as per-kernel-
    offset 0/1 row-selection matmuls on the MXU (no slices/reshapes)."""
    kk, n_rows_out, _ = s_ref.shape
    c_out = w_ref.shape[2]
    acc = jnp.zeros((n_rows_out, c_out), jnp.float32)
    for t in range(kk):                      # static unroll over kernel offsets
        rows = jnp.dot(s_ref[t], prev_bf16,
                       preferred_element_type=jnp.float32).astype(jnp.bfloat16)
        acc = acc + jnp.dot(rows, w_ref[t], preferred_element_type=jnp.float32)
    return jnp.maximum(acc + b_ref[...], 0.0)


def _atari_body_kernel(p1_ref, w1_ref, b1_ref,
                       s2_ref, w2_ref, b2_ref,
                       s3_ref, w3_ref, b3_ref,
                       o_ref):
    # conv1: relu(patches1 @ W1 + b1)            -> [M1, 32], stays in VMEM
    y1 = jnp.dot(p1_ref[...], w1_ref[...], preferred_element_type=jnp.float32)
    y1 = jnp.maximum(y1 + b1_ref[...], 0.0).astype(jnp.bfloat16)
    # conv2 (in-kernel unfold via selection matmuls)   -> [M2, 64], VMEM only
    y2 = _unfold_conv_relu(y1, s2_ref, w2_ref, b2_ref).astype(jnp.bfloat16)
    # conv3                                            -> [M3, 64]
    y3 = _unfold_conv_relu(y2, s3_ref, w3_ref, b3_ref)
    o_ref[...] = y3


# ----------------------------------------------------------------------------
# Trace-time glue (runs once under jit; only touches HBM-resident tensors)
# ----------------------------------------------------------------------------
def _im2col(x, k, stride):
    """x: (B, C, H, W) -> patches (B*Ho*Wo, C*k*k), column order (c, kh, kw)."""
    B, C, H, W = x.shape
    Ho = (H - k) // stride + 1
    Wo = (W - k) // stride + 1
    cols = []
    for i in range(k):
        for j in range(k):
            cols.append(x[:, :, i:i + stride * Ho:stride, j:j + stride * Wo:stride])
    p = jnp.stack(cols, axis=2)                # (B, C, k*k, Ho, Wo)
    p = p.transpose(0, 3, 4, 1, 2)             # (B, Ho, Wo, C, k*k)
    return p.reshape(B * Ho * Wo, C * k * k), Ho, Wo


def _make_unfold_selectors(B, Hi, Wi, k, stride, dtype=jnp.bfloat16):
    """0/1 row-selection matrices S[k*k, B*Ho*Wo, B*Hi*Wi]:
    S[i*k+j] @ prev gathers, for every output position (b, oh, ow), the input
    row (b, stride*oh+i, stride*ow+j).  Built once at trace time (constants)."""
    Ho = (Hi - k) // stride + 1
    Wo = (Wi - k) // stride + 1
    Mi = B * Hi * Wi
    bb, oh, ow = jnp.meshgrid(jnp.arange(B), jnp.arange(Ho), jnp.arange(Wo),
                              indexing="ij")
    sel = []
    for i in range(k):
        for j in range(k):
            r_in = ((bb * Hi + stride * oh + i) * Wi
                    + (stride * ow + j)).reshape(-1)          # [B*Ho*Wo]
            sel.append(jax.nn.one_hot(r_in, Mi, dtype=dtype))
    return jnp.stack(sel, axis=0), Ho, Wo


def atari_body_forward(params, x):
    """x: (B, C, H, W) -> (B, 64*H3*W3), matching
    relu(conv3(relu(conv2(relu(conv1(x)))))).view(B, -1)."""
    B, C, H, W = x.shape
    w1, b1 = params["conv1"]
    w2, b2 = params["conv2"]
    w3, b3 = params["conv3"]
    O1, O2, O3 = w1.shape[0], w2.shape[0], w3.shape[0]
    k1, k2, k3 = w1.shape[2], w2.shape[2], w3.shape[2]
    s1, s2, s3 = 4, 2, 1

    # conv1 operands: im2col of the HBM input + reordered weight, bf16 for MXU.
    patches1, H1, W1 = _im2col(x, k1, s1)                     # [M1, C*k1*k1]
    patches1 = patches1.astype(jnp.bfloat16)
    w1_mat = w1.reshape(O1, -1).T.astype(jnp.bfloat16)        # [C*k1*k1, O1]

    # conv2 / conv3 operands: per-offset weight slices + row selectors.
    S2, H2, W2 = _make_unfold_selectors(B, H1, W1, k2, s2)    # [k2*k2, M2, M1]
    w2_stack = w2.transpose(2, 3, 1, 0).reshape(k2 * k2, O1, O2).astype(jnp.bfloat16)
    S3, H3, W3 = _make_unfold_selectors(B, H2, W2, k3, s3)    # [k3*k3, M3, M2]
    w3_stack = w3.transpose(2, 3, 1, 0).reshape(k3 * k3, O2, O3).astype(jnp.bfloat16)
    M3 = B * H3 * W3

    out = pl.pallas_call(
        _atari_body_kernel,
        out_shape=jax.ShapeDtypeStruct((M3, O3), jnp.float32),
        grid=(1,),
        in_specs=[
            pl.BlockSpec(patches1.shape, lambda i: (0, 0)),
            pl.BlockSpec(w1_mat.shape, lambda i: (0, 0)),
            pl.BlockSpec((1, O1), lambda i: (0, 0)),
            pl.BlockSpec(S2.shape, lambda i: (0, 0, 0)),
            pl.BlockSpec(w2_stack.shape, lambda i: (0, 0, 0)),
            pl.BlockSpec((1, O2), lambda i: (0, 0)),
            pl.BlockSpec(S3.shape, lambda i: (0, 0, 0)),
            pl.BlockSpec(w3_stack.shape, lambda i: (0, 0, 0)),
            pl.BlockSpec((1, O3), lambda i: (0, 0)),
        ],
        out_specs=pl.BlockSpec((M3, O3), lambda i: (0, 0)),
        compiler_params=pltpu.CompilerParams(
            dimension_semantics=("arbitrary",)),
    )(patches1, w1_mat, b1.reshape(1, O1),
      S2, w2_stack, b2.reshape(1, O2),
      S3, w3_stack, b3.reshape(1, O3))

    # Kernel rows are (b, h3, w3); PyTorch's .view(B, -1) flattens NCHW.
    return out.reshape(B, H3, W3, O3).transpose(0, 3, 1, 2).reshape(B, -1)


# ----------------------------------------------------------------------------
# Params init (mimics PyTorch Conv2d defaults) + pure-JAX reference
# ----------------------------------------------------------------------------
def init_atari_body_params(key, in_channels):
    def conv_init(key, o, c, k):
        kw, kb = jax.random.split(key)
        fan_in = c * k * k
        bound = 1.0 / jnp.sqrt(fan_in)
        w = jax.random.uniform(kw, (o, c, k, k), jnp.float32, -bound, bound)
        b = jax.random.uniform(kb, (o,), jnp.float32, -bound, bound)
        return w, b

    k1, k2, k3 = jax.random.split(key, 3)
    return {
        "conv1": conv_init(k1, 32, in_channels, 8),   # stride 4
        "conv2": conv_init(k2, 64, 32, 4),            # stride 2
        "conv3": conv_init(k3, 64, 64, 3),            # stride 1
    }


def _reference_forward(params, x):
    dn = ("NCHW", "OIHW", "NCHW")
    for name, stride in (("conv1", 4), ("conv2", 2), ("conv3", 1)):
        w, b = params[name]
        x = jax.lax.conv_general_dilated(
            x, w, (stride, stride), "VALID", dimension_numbers=dn,
            precision=jax.lax.Precision.HIGHEST)
        x = jnp.maximum(x + b[None, :, None, None], 0.0)
    return x.reshape(x.shape[0], -1)


if __name__ == "__main__":
    key = jax.random.PRNGKey(0)
    k_params, k_x = jax.random.split(key)

    # Smallest input consistent with the conv stack:
    # conv1 (k8,s4): 36 -> 8 ; conv2 (k4,s2): 8 -> 3 ; conv3 (k3,s1): 3 -> 1
    B, C, H, W = 2, 4, 36, 36
    x = jax.random.uniform(k_x, (B, C, H, W), jnp.float32)
    params = init_atari_body_params(k_params, C)

    fwd = jax.jit(atari_body_forward)
    feats = jax.block_until_ready(fwd(params, x))
    assert feats.shape == (B, 64 * 1 * 1), feats.shape

    ref = jax.block_until_ready(_reference_forward(params, x))
    max_err = float(jnp.max(jnp.abs(feats - ref)))
    # 2e-2 covers bf16 MXU operands vs. the f32 HIGHEST-precision reference.
    assert max_err < 2e-2, f"max abs error too large: {max_err}"

    print("KERNEL_OK")
</pallas_src>

<mosaic_0001>
module attributes {stable_mosaic.version = 11 : i64} {
  func.func @_atari_body_kernel(%arg0: i32, %arg1: memref<128x256xbf16, #tpu.memory_space<vmem>>, %arg2: memref<256x32xbf16, #tpu.memory_space<vmem>>, %arg3: memref<1x32xf32, #tpu.memory_space<vmem>>, %arg4: memref<16x18x128xbf16, #tpu.memory_space<vmem>>, %arg5: memref<16x32x64xbf16, #tpu.memory_space<vmem>>, %arg6: memref<1x64xf32, #tpu.memory_space<vmem>>, %arg7: memref<9x2x18xbf16, #tpu.memory_space<vmem>>, %arg8: memref<9x64x64xbf16, #tpu.memory_space<vmem>>, %arg9: memref<1x64xf32, #tpu.memory_space<vmem>>, %arg10: memref<2x64xf32, #tpu.memory_space<vmem>>) attributes {dimension_semantics = [#tpu.dimension_semantics<arbitrary>], iteration_bounds = array<i64: 1>, scalar_prefetch = 0 : i64, scratch_operands = 0 : i64, tpu.core_type = #tpu.core_type<tc>, window_params = [{pipeline_mode = #tpu.pipeline_mode<synchronous>, transform_indices = @transform_0, window_bounds = array<i64: 128, 256>}, {pipeline_mode = #tpu.pipeline_mode<synchronous>, transform_indices = @transform_1, window_bounds = array<i64: 256, 32>}, {pipeline_mode = #tpu.pipeline_mode<synchronous>, transform_indices = @transform_2, window_bounds = array<i64: 1, 32>}, {pipeline_mode = #tpu.pipeline_mode<synchronous>, transform_indices = @transform_3, window_bounds = array<i64: 16, 18, 128>}, {pipeline_mode = #tpu.pipeline_mode<synchronous>, transform_indices = @transform_4, window_bounds = array<i64: 16, 32, 64>}, {pipeline_mode = #tpu.pipeline_mode<synchronous>, transform_indices = @transform_5, window_bounds = array<i64: 1, 64>}, {pipeline_mode = #tpu.pipeline_mode<synchronous>, transform_indices = @transform_6, window_bounds = array<i64: 9, 2, 18>}, {pipeline_mode = #tpu.pipeline_mode<synchronous>, transform_indices = @transform_7, window_bounds = array<i64: 9, 64, 64>}, {pipeline_mode = #tpu.pipeline_mode<synchronous>, transform_indices = @transform_8, window_bounds = array<i64: 1, 64>}, {pipeline_mode = #tpu.pipeline_mode<synchronous>, transform_indices = @transform_9, window_bounds = array<i64: 2, 64>}]} {
    %c0 = arith.constant 0 : index
    %c0_0 = arith.constant 0 : index
    %0 = vector.load %arg1[%c0, %c0_0] : memref<128x256xbf16, #tpu.memory_space<vmem>>, vector<128x256xbf16>
    %c0_1 = arith.constant 0 : index
    %c0_2 = arith.constant 0 : index
    %1 = vector.load %arg2[%c0_1, %c0_2] : memref<256x32xbf16, #tpu.memory_space<vmem>>, vector<256x32xbf16>
    %cst = arith.constant dense<0.000000e+00> : vector<128x32xf32>
    %2 = tpu.matmul %0, %1, %cst {dimension_numbers = #tpu.dot_dimension_numbers<[1], [0], [0], [1], [0, 0, 1, 1], [], []>} : vector<128x256xbf16>, vector<256x32xbf16>, vector<128x32xf32> -> vector<128x32xf32>
    %c0_3 = arith.constant 0 : index
    %c0_4 = arith.constant 0 : index
    %3 = vector.load %arg3[%c0_3, %c0_4] : memref<1x32xf32, #tpu.memory_space<vmem>>, vector<1x32xf32>
    %4 = vector.broadcast %3 : vector<1x32xf32> to vector<128x32xf32>
    %5 = arith.addf %2, %4 : vector<128x32xf32>
    %cst_5 = arith.constant 0.000000e+00 : f32
    %6 = vector.broadcast %cst_5 : f32 to vector<128x32xf32>
    %7 = arith.maximumf %5, %6 : vector<128x32xf32>
    %8 = arith.truncf %7 : vector<128x32xf32> to vector<128x32xbf16>
    %cst_6 = arith.constant 0.000000e+00 : f32
    %9 = vector.broadcast %cst_6 : f32 to vector<18x64xf32>
    %c0_7 = arith.constant 0 : index
    %c0_8 = arith.constant 0 : index
    %c0_9 = arith.constant 0 : index
    %10 = vector.load %arg4[%c0_7, %c0_8, %c0_9] : memref<16x18x128xbf16, #tpu.memory_space<vmem>>, vector<1x18x128xbf16>
    %11 = vector.shape_cast %10 : vector<1x18x128xbf16> to vector<18x128xbf16>
    %cst_10 = arith.constant dense<0.000000e+00> : vector<18x32xf32>
    %12 = tpu.matmul %11, %8, %cst_10 {dimension_numbers = #tpu.dot_dimension_numbers<[1], [0], [0], [1], [0, 0, 1, 1], [], []>} : vector<18x128xbf16>, vector<128x32xbf16>, vector<18x32xf32> -> vector<18x32xf32>
    %13 = arith.truncf %12 : vector<18x32xf32> to vector<18x32xbf16>
    %c0_11 = arith.constant 0 : index
    %c0_12 = arith.constant 0 : index
    %c0_13 = arith.constant 0 : index
    %14 = vector.load %arg5[%c0_11, %c0_12, %c0_13] : memref<16x32x64xbf16, #tpu.memory_space<vmem>>, vector<1x32x64xbf16>
    %15 = vector.shape_cast %14 : vector<1x32x64xbf16> to vector<32x64xbf16>
    %cst_14 = arith.constant dense<0.000000e+00> : vector<18x64xf32>
    %16 = tpu.matmul %13, %15, %cst_14 {dimension_numbers = #tpu.dot_dimension_numbers<[1], [0], [0], [1], [0, 0, 1, 1], [], []>} : vector<18x32xbf16>, vector<32x64xbf16>, vector<18x64xf32> -> vector<18x64xf32>
    %17 = arith.addf %9, %16 : vector<18x64xf32>
    %c1 = arith.constant 1 : index
    %c0_15 = arith.constant 0 : index
    %c0_16 = arith.constant 0 : index
    %18 = vector.load %arg4[%c1, %c0_15, %c0_16] : memref<16x18x128xbf16, #tpu.memory_space<vmem>>, vector<1x18x128xbf16>
    %19 = vector.shape_cast %18 : vector<1x18x128xbf16> to vector<18x128xbf16>
    %cst_17 = arith.constant dense<0.000000e+00> : vector<18x32xf32>
    %20 = tpu.matmul %19, %8, %cst_17 {dimension_numbers = #tpu.dot_dimension_numbers<[1], [0], [0], [1], [0, 0, 1, 1], [], []>} : vector<18x128xbf16>, vector<128x32xbf16>, vector<18x32xf32> -> vector<18x32xf32>
    %21 = arith.truncf %20 : vector<18x32xf32> to vector<18x32xbf16>
    %c1_18 = arith.constant 1 : index
    %c0_19 = arith.constant 0 : index
    %c0_20 = arith.constant 0 : index
    %22 = vector.load %arg5[%c1_18, %c0_19, %c0_20] : memref<16x32x64xbf16, #tpu.memory_space<vmem>>, vector<1x32x64xbf16>
    %23 = vector.shape_cast %22 : vector<1x32x64xbf16> to vector<32x64xbf16>
    %cst_21 = arith.constant dense<0.000000e+00> : vector<18x64xf32>
    %24 = tpu.matmul %21, %23, %cst_21 {dimension_numbers = #tpu.dot_dimension_numbers<[1], [0], [0], [1], [0, 0, 1, 1], [], []>} : vector<18x32xbf16>, vector<32x64xbf16>, vector<18x64xf32> -> vector<18x64xf32>
    %25 = arith.addf %17, %24 : vector<18x64xf32>
    %c2 = arith.constant 2 : index
    %c0_22 = arith.constant 0 : index
    %c0_23 = arith.constant 0 : index
    %26 = vector.load %arg4[%c2, %c0_22, %c0_23] : memref<16x18x128xbf16, #tpu.memory_space<vmem>>, vector<1x18x128xbf16>
    %27 = vector.shape_cast %26 : vector<1x18x128xbf16> to vector<18x128xbf16>
    %cst_24 = arith.constant dense<0.000000e+00> : vector<18x32xf32>
    %28 = tpu.matmul %27, %8, %cst_24 {dimension_numbers = #tpu.dot_dimension_numbers<[1], [0], [0], [1], [0, 0, 1, 1], [], []>} : vector<18x128xbf16>, vector<128x32xbf16>, vector<18x32xf32> -> vector<18x32xf32>
    %29 = arith.truncf %28 : vector<18x32xf32> to vector<18x32xbf16>
    %c2_25 = arith.constant 2 : index
    %c0_26 = arith.constant 0 : index
    %c0_27 = arith.constant 0 : index
    %30 = vector.load %arg5[%c2_25, %c0_26, %c0_27] : memref<16x32x64xbf16, #tpu.memory_space<vmem>>, vector<1x32x64xbf16>
    %31 = vector.shape_cast %30 : vector<1x32x64xbf16> to vector<32x64xbf16>
    %cst_28 = arith.constant dense<0.000000e+00> : vector<18x64xf32>
    %32 = tpu.matmul %29, %31, %cst_28 {dimension_numbers = #tpu.dot_dimension_numbers<[1], [0], [0], [1], [0, 0, 1, 1], [], []>} : vector<18x32xbf16>, vector<32x64xbf16>, vector<18x64xf32> -> vector<18x64xf32>
    %33 = arith.addf %25, %32 : vector<18x64xf32>
    %c3 = arith.constant 3 : index
    %c0_29 = arith.constant 0 : index
    %c0_30 = arith.constant 0 : index
    %34 = vector.load %arg4[%c3, %c0_29, %c0_30] : memref<16x18x128xbf16, #tpu.memory_space<vmem>>, vector<1x18x128xbf16>
    %35 = vector.shape_cast %34 : vector<1x18x128xbf16> to vector<18x128xbf16>
    %cst_31 = arith.constant dense<0.000000e+00> : vector<18x32xf32>
    %36 = tpu.matmul %35, %8, %cst_31 {dimension_numbers = #tpu.dot_dimension_numbers<[1], [0], [0], [1], [0, 0, 1, 1], [], []>} : vector<18x128xbf16>, vector<128x32xbf16>, vector<18x32xf32> -> vector<18x32xf32>
    %37 = arith.truncf %36 : vector<18x32xf32> to vector<18x32xbf16>
    %c3_32 = arith.constant 3 : index
    %c0_33 = arith.constant 0 : index
    %c0_34 = arith.constant 0 : index
    %38 = vector.load %arg5[%c3_32, %c0_33, %c0_34] : memref<16x32x64xbf16, #tpu.memory_space<vmem>>, vector<1x32x64xbf16>
    %39 = vector.shape_cast %38 : vector<1x32x64xbf16> to vector<32x64xbf16>
    %cst_35 = arith.constant dense<0.000000e+00> : vector<18x64xf32>
    %40 = tpu.matmul %37, %39, %cst_35 {dimension_numbers = #tpu.dot_dimension_numbers<[1], [0], [0], [1], [0, 0, 1, 1], [], []>} : vector<18x32xbf16>, vector<32x64xbf16>, vector<18x64xf32> -> vector<18x64xf32>
    %41 = arith.addf %33, %40 : vector<18x64xf32>
    %c4 = arith.constant 4 : index
    %c0_36 = arith.constant 0 : index
    %c0_37 = arith.constant 0 : index
    %42 = vector.load %arg4[%c4, %c0_36, %c0_37] : memref<16x18x128xbf16, #tpu.memory_space<vmem>>, vector<1x18x128xbf16>
    %43 = vector.shape_cast %42 : vector<1x18x128xbf16> to vector<18x128xbf16>
    %cst_38 = arith.constant dense<0.000000e+00> : vector<18x32xf32>
    %44 = tpu.matmul %43, %8, %cst_38 {dimension_numbers = #tpu.dot_dimension_numbers<[1], [0], [0], [1], [0, 0, 1, 1], [], []>} : vector<18x128xbf16>, vector<128x32xbf16>, vector<18x32xf32> -> vector<18x32xf32>
    %45 = arith.truncf %44 : vector<18x32xf32> to vector<18x32xbf16>
    %c4_39 = arith.constant 4 : index
    %c0_40 = arith.constant 0 : index
    %c0_41 = arith.constant 0 : index
    %46 = vector.load %arg5[%c4_39, %c0_40, %c0_41] : memref<16x32x64xbf16, #tpu.memory_space<vmem>>, vector<1x32x64xbf16>
    %47 = vector.shape_cast %46 : vector<1x32x64xbf16> to vector<32x64xbf16>
    %cst_42 = arith.constant dense<0.000000e+00> : vector<18x64xf32>
    %48 = tpu.matmul %45, %47, %cst_42 {dimension_numbers = #tpu.dot_dimension_numbers<[1], [0], [0], [1], [0, 0, 1, 1], [], []>} : vector<18x32xbf16>, vector<32x64xbf16>, vector<18x64xf32> -> vector<18x64xf32>
    %49 = arith.addf %41, %48 : vector<18x64xf32>
    %c5 = arith.constant 5 : index
    %c0_43 = arith.constant 0 : index
    %c0_44 = arith.constant 0 : index
    %50 = vector.load %arg4[%c5, %c0_43, %c0_44] : memref<16x18x128xbf16, #tpu.memory_space<vmem>>, vector<1x18x128xbf16>
    %51 = vector.shape_cast %50 : vector<1x18x128xbf16> to vector<18x128xbf16>
    %cst_45 = arith.constant dense<0.000000e+00> : vector<18x32xf32>
    %52 = tpu.matmul %51, %8, %cst_45 {dimension_numbers = #tpu.dot_dimension_numbers<[1], [0], [0], [1], [0, 0, 1, 1], [], []>} : vector<18x128xbf16>, vector<128x32xbf16>, vector<18x32xf32> -> vector<18x32xf32>
    %53 = arith.truncf %52 : vector<18x32xf32> to vector<18x32xbf16>
    %c5_46 = arith.constant 5 : index
    %c0_47 = arith.constant 0 : index
    %c0_48 = arith.constant 0 : index
    %54 = vector.load %arg5[%c5_46, %c0_47, %c0_48] : memref<16x32x64xbf16, #tpu.memory_space<vmem>>, vector<1x32x64xbf16>
    %55 = vector.shape_cast %54 : vector<1x32x64xbf16> to vector<32x64xbf16>
    %cst_49 = arith.constant dense<0.000000e+00> : vector<18x64xf32>
    %56 = tpu.matmul %53, %55, %cst_49 {dimension_numbers = #tpu.dot_dimension_numbers<[1], [0], [0], [1], [0, 0, 1, 1], [], []>} : vector<18x32xbf16>, vector<32x64xbf16>, vector<18x64xf32> -> vector<18x64xf32>
    %57 = arith.addf %49, %56 : vector<18x64xf32>
    %c6 = arith.constant 6 : index
    %c0_50 = arith.constant 0 : index
    %c0_51 = arith.constant 0 : index
    %58 = vector.load %arg4[%c6, %c0_50, %c0_51] : memref<16x18x128xbf16, #tpu.memory_space<vmem>>, vector<1x18x128xbf16>
    %59 = vector.shape_cast %58 : vector<1x18x128xbf16> to vector<18x128xbf16>
    %cst_52 = arith.constant dense<0.000000e+00> : vector<18x32xf32>
    %60 = tpu.matmul %59, %8, %cst_52 {dimension_numbers = #tpu.dot_dimension_numbers<[1], [0], [0], [1], [0, 0, 1, 1], [], []>} : vector<18x128xbf16>, vector<128x32xbf16>, vector<18x32xf32> -> vector<18x32xf32>
    %61 = arith.truncf %60 : vector<18x32xf32> to vector<18x32xbf16>
    %c6_53 = arith.constant 6 : index
    %c0_54 = arith.constant 0 : index
    %c0_55 = arith.constant 0 : index
    %62 = vector.load %arg5[%c6_53, %c0_54, %c0_55] : memref<16x32x64xbf16, #tpu.memory_space<vmem>>, vector<1x32x64xbf16>
    %63 = vector.shape_cast %62 : vector<1x32x64xbf16> to vector<32x64xbf16>
    %cst_56 = arith.constant dense<0.000000e+00> : vector<18x64xf32>
    %64 = tpu.matmul %61, %63, %cst_56 {dimension_numbers = #tpu.dot_dimension_numbers<[1], [0], [0], [1], [0, 0, 1, 1], [], []>} : vector<18x32xbf16>, vector<32x64xbf16>, vector<18x64xf32> -> vector<18x64xf32>
    %65 = arith.addf %57, %64 : vector<18x64xf32>
    %c7 = arith.constant 7 : index
    %c0_57 = arith.constant 0 : index
    %c0_58 = arith.constant 0 : index
    %66 = vector.load %arg4[%c7, %c0_57, %c0_58] : memref<16x18x128xbf16, #tpu.memory_space<vmem>>, vector<1x18x128xbf16>
    %67 = vector.shape_cast %66 : vector<1x18x128xbf16> to vector<18x128xbf16>
    %cst_59 = arith.constant dense<0.000000e+00> : vector<18x32xf32>
    %68 = tpu.matmul %67, %8, %cst_59 {dimension_numbers = #tpu.dot_dimension_numbers<[1], [0], [0], [1], [0, 0, 1, 1], [], []>} : vector<18x128xbf16>, vector<128x32xbf16>, vector<18x32xf32> -> vector<18x32xf32>
    %69 = arith.truncf %68 : vector<18x32xf32> to vector<18x32xbf16>
    %c7_60 = arith.constant 7 : index
    %c0_61 = arith.constant 0 : index
    %c0_62 = arith.constant 0 : index
    %70 = vector.load %arg5[%c7_60, %c0_61, %c0_62] : memref<16x32x64xbf16, #tpu.memory_space<vmem>>, vector<1x32x64xbf16>
    %71 = vector.shape_cast %70 : vector<1x32x64xbf16> to vector<32x64xbf16>
    %cst_63 = arith.constant dense<0.000000e+00> : vector<18x64xf32>
    %72 = tpu.matmul %69, %71, %cst_63 {dimension_numbers = #tpu.dot_dimension_numbers<[1], [0], [0], [1], [0, 0, 1, 1], [], []>} : vector<18x32xbf16>, vector<32x64xbf16>, vector<18x64xf32> -> vector<18x64xf32>
    %73 = arith.addf %65, %72 : vector<18x64xf32>
    %c8 = arith.constant 8 : index
    %c0_64 = arith.constant 0 : index
    %c0_65 = arith.constant 0 : index
    %74 = vector.load %arg4[%c8, %c0_64, %c0_65] : memref<16x18x128xbf16, #tpu.memory_space<vmem>>, vector<1x18x128xbf16>
    %75 = vector.shape_cast %74 : vector<1x18x128xbf16> to vector<18x128xbf16>
    %cst_66 = arith.constant dense<0.000000e+00> : vector<18x32xf32>
    %76 = tpu.matmul %75, %8, %cst_66 {dimension_numbers = #tpu.dot_dimension_numbers<[1], [0], [0], [1], [0, 0, 1, 1], [], []>} : vector<18x128xbf16>, vector<128x32xbf16>, vector<18x32xf32> -> vector<18x32xf32>
    %77 = arith.truncf %76 : vector<18x32xf32> to vector<18x32xbf16>
    %c8_67 = arith.constant 8 : index
    %c0_68 = arith.constant 0 : index
    %c0_69 = arith.constant 0 : index
    %78 = vector.load %arg5[%c8_67, %c0_68, %c0_69] : memref<16x32x64xbf16, #tpu.memory_space<vmem>>, vector<1x32x64xbf16>
    %79 = vector.shape_cast %78 : vector<1x32x64xbf16> to vector<32x64xbf16>
    %cst_70 = arith.constant dense<0.000000e+00> : vector<18x64xf32>
    %80 = tpu.matmul %77, %79, %cst_70 {dimension_numbers = #tpu.dot_dimension_numbers<[1], [0], [0], [1], [0, 0, 1, 1], [], []>} : vector<18x32xbf16>, vector<32x64xbf16>, vector<18x64xf32> -> vector<18x64xf32>
    %81 = arith.addf %73, %80 : vector<18x64xf32>
    %c9 = arith.constant 9 : index
    %c0_71 = arith.constant 0 : index
    %c0_72 = arith.constant 0 : index
    %82 = vector.load %arg4[%c9, %c0_71, %c0_72] : memref<16x18x128xbf16, #tpu.memory_space<vmem>>, vector<1x18x128xbf16>
    %83 = vector.shape_cast %82 : vector<1x18x128xbf16> to vector<18x128xbf16>
    %cst_73 = arith.constant dense<0.000000e+00> : vector<18x32xf32>
    %84 = tpu.matmul %83, %8, %cst_73 {dimension_numbers = #tpu.dot_dimension_numbers<[1], [0], [0], [1], [0, 0, 1, 1], [], []>} : vector<18x128xbf16>, vector<128x32xbf16>, vector<18x32xf32> -> vector<18x32xf32>
    %85 = arith.truncf %84 : vector<18x32xf32> to vector<18x32xbf16>
    %c9_74 = arith.constant 9 : index
    %c0_75 = arith.constant 0 : index
    %c0_76 = arith.constant 0 : index
    %86 = vector.load %arg5[%c9_74, %c0_75, %c0_76] : memref<16x32x64xbf16, #tpu.memory_space<vmem>>, vector<1x32x64xbf16>
    %87 = vector.shape_cast %86 : vector<1x32x64xbf16> to vector<32x64xbf16>
    %cst_77 = arith.constant dense<0.000000e+00> : vector<18x64xf32>
    %88 = tpu.matmul %85, %87, %cst_77 {dimension_numbers = #tpu.dot_dimension_numbers<[1], [0], [0], [1], [0, 0, 1, 1], [], []>} : vector<18x32xbf16>, vector<32x64xbf16>, vector<18x64xf32> -> vector<18x64xf32>
    %89 = arith.addf %81, %88 : vector<18x64xf32>
    %c10 = arith.constant 10 : index
    %c0_78 = arith.constant 0 : index
    %c0_79 = arith.constant 0 : index
    %90 = vector.load %arg4[%c10, %c0_78, %c0_79] : memref<16x18x128xbf16, #tpu.memory_space<vmem>>, vector<1x18x128xbf16>
    %91 = vector.shape_cast %90 : vector<1x18x128xbf16> to vector<18x128xbf16>
    %cst_80 = arith.constant dense<0.000000e+00> : vector<18x32xf32>
    %92 = tpu.matmul %91, %8, %cst_80 {dimension_numbers = #tpu.dot_dimension_numbers<[1], [0], [0], [1], [0, 0, 1, 1], [], []>} : vector<18x128xbf16>, vector<128x32xbf16>, vector<18x32xf32> -> vector<18x32xf32>
    %93 = arith.truncf %92 : vector<18x32xf32> to vector<18x32xbf16>
    %c10_81 = arith.constant 10 : index
    %c0_82 = arith.constant 0 : index
    %c0_83 = arith.constant 0 : index
    %94 = vector.load %arg5[%c10_81, %c0_82, %c0_83] : memref<16x32x64xbf16, #tpu.memory_space<vmem>>, vector<1x32x64xbf16>
    %95 = vector.shape_cast %94 : vector<1x32x64xbf16> to vector<32x64xbf16>
    %cst_84 = arith.constant dense<0.000000e+00> : vector<18x64xf32>
    %96 = tpu.matmul %93, %95, %cst_84 {dimension_numbers = #tpu.dot_dimension_numbers<[1], [0], [0], [1], [0, 0, 1, 1], [], []>} : vector<18x32xbf16>, vector<32x64xbf16>, vector<18x64xf32> -> vector<18x64xf32>
    %97 = arith.addf %89, %96 : vector<18x64xf32>
    %c11 = arith.constant 11 : index
    %c0_85 = arith.constant 0 : index
    %c0_86 = arith.constant 0 : index
    %98 = vector.load %arg4[%c11, %c0_85, %c0_86] : memref<16x18x128xbf16, #tpu.memory_space<vmem>>, vector<1x18x128xbf16>
    %99 = vector.shape_cast %98 : vector<1x18x128xbf16> to vector<18x128xbf16>
    %cst_87 = arith.constant dense<0.000000e+00> : vector<18x32xf32>
    %100 = tpu.matmul %99, %8, %cst_87 {dimension_numbers = #tpu.dot_dimension_numbers<[1], [0], [0], [1], [0, 0, 1, 1], [], []>} : vector<18x128xbf16>, vector<128x32xbf16>, vector<18x32xf32> -> vector<18x32xf32>
    %101 = arith.truncf %100 : vector<18x32xf32> to vector<18x32xbf16>
    %c11_88 = arith.constant 11 : index
    %c0_89 = arith.constant 0 : index
    %c0_90 = arith.constant 0 : index
    %102 = vector.load %arg5[%c11_88, %c0_89, %c0_90] : memref<16x32x64xbf16, #tpu.memory_space<vmem>>, vector<1x32x64xbf16>
    %103 = vector.shape_cast %102 : vector<1x32x64xbf16> to vector<32x64xbf16>
    %cst_91 = arith.constant dense<0.000000e+00> : vector<18x64xf32>
    %104 = tpu.matmul %101, %103, %cst_91 {dimension_numbers = #tpu.dot_dimension_numbers<[1], [0], [0], [1], [0, 0, 1, 1], [], []>} : vector<18x32xbf16>, vector<32x64xbf16>, vector<18x64xf32> -> vector<18x64xf32>
    %105 = arith.addf %97, %104 : vector<18x64xf32>
    %c12 = arith.constant 12 : index
    %c0_92 = arith.constant 0 : index
    %c0_93 = arith.constant 0 : index
    %106 = vector.load %arg4[%c12, %c0_92, %c0_93] : memref<16x18x128xbf16, #tpu.memory_space<vmem>>, vector<1x18x128xbf16>
    %107 = vector.shape_cast %106 : vector<1x18x128xbf16> to vector<18x128xbf16>
    %cst_94 = arith.constant dense<0.000000e+00> : vector<18x32xf32>
    %108 = tpu.matmul %107, %8, %cst_94 {dimension_numbers = #tpu.dot_dimension_numbers<[1], [0], [0], [1], [0, 0, 1, 1], [], []>} : vector<18x128xbf16>, vector<128x32xbf16>, vector<18x32xf32> -> vector<18x32xf32>
    %109 = arith.truncf %108 : vector<18x32xf32> to vector<18x32xbf16>
    %c12_95 = arith.constant 12 : index
    %c0_96 = arith.constant 0 : index
    %c0_97 = arith.constant 0 : index
    %110 = vector.load %arg5[%c12_95, %c0_96, %c0_97] : memref<16x32x64xbf16, #tpu.memory_space<vmem>>, vector<1x32x64xbf16>
    %111 = vector.shape_cast %110 : vector<1x32x64xbf16> to vector<32x64xbf16>
    %cst_98 = arith.constant dense<0.000000e+00> : vector<18x64xf32>
    %112 = tpu.matmul %109, %111, %cst_98 {dimension_numbers = #tpu.dot_dimension_numbers<[1], [0], [0], [1], [0, 0, 1, 1], [], []>} : vector<18x32xbf16>, vector<32x64xbf16>, vector<18x64xf32> -> vector<18x64xf32>
    %113 = arith.addf %105, %112 : vector<18x64xf32>
    %c13 = arith.constant 13 : index
    %c0_99 = arith.constant 0 : index
    %c0_100 = arith.constant 0 : index
    %114 = vector.load %arg4[%c13, %c0_99, %c0_100] : memref<16x18x128xbf16, #tpu.memory_space<vmem>>, vector<1x18x128xbf16>
    %115 = vector.shape_cast %114 : vector<1x18x128xbf16> to vector<18x128xbf16>
    %cst_101 = arith.constant dense<0.000000e+00> : vector<18x32xf32>
    %116 = tpu.matmul %115, %8, %cst_101 {dimension_numbers = #tpu.dot_dimension_numbers<[1], [0], [0], [1], [0, 0, 1, 1], [], []>} : vector<18x128xbf16>, vector<128x32xbf16>, vector<18x32xf32> -> vector<18x32xf32>
    %117 = arith.truncf %116 : vector<18x32xf32> to vector<18x32xbf16>
    %c13_102 = arith.constant 13 : index
    %c0_103 = arith.constant 0 : index
    %c0_104 = arith.constant 0 : index
    %118 = vector.load %arg5[%c13_102, %c0_103, %c0_104] : memref<16x32x64xbf16, #tpu.memory_space<vmem>>, vector<1x32x64xbf16>
    %119 = vector.shape_cast %118 : vector<1x32x64xbf16> to vector<32x64xbf16>
    %cst_105 = arith.constant dense<0.000000e+00> : vector<18x64xf32>
    %120 = tpu.matmul %117, %119, %cst_105 {dimension_numbers = #tpu.dot_dimension_numbers<[1], [0], [0], [1], [0, 0, 1, 1], [], []>} : vector<18x32xbf16>, vector<32x64xbf16>, vector<18x64xf32> -> vector<18x64xf32>
    %121 = arith.addf %113, %120 : vector<18x64xf32>
    %c14 = arith.constant 14 : index
    %c0_106 = arith.constant 0 : index
    %c0_107 = arith.constant 0 : index
    %122 = vector.load %arg4[%c14, %c0_106, %c0_107] : memref<16x18x128xbf16, #tpu.memory_space<vmem>>, vector<1x18x128xbf16>
    %123 = vector.shape_cast %122 : vector<1x18x128xbf16> to vector<18x128xbf16>
    %cst_108 = arith.constant dense<0.000000e+00> : vector<18x32xf32>
    %124 = tpu.matmul %123, %8, %cst_108 {dimension_numbers = #tpu.dot_dimension_numbers<[1], [0], [0], [1], [0, 0, 1, 1], [], []>} : vector<18x128xbf16>, vector<128x32xbf16>, vector<18x32xf32> -> vector<18x32xf32>
    %125 = arith.truncf %124 : vector<18x32xf32> to vector<18x32xbf16>
    %c14_109 = arith.constant 14 : index
    %c0_110 = arith.constant 0 : index
    %c0_111 = arith.constant 0 : index
    %126 = vector.load %arg5[%c14_109, %c0_110, %c0_111] : memref<16x32x64xbf16, #tpu.memory_space<vmem>>, vector<1x32x64xbf16>
    %127 = vector.shape_cast %126 : vector<1x32x64xbf16> to vector<32x64xbf16>
    %cst_112 = arith.constant dense<0.000000e+00> : vector<18x64xf32>
    %128 = tpu.matmul %125, %127, %cst_112 {dimension_numbers = #tpu.dot_dimension_numbers<[1], [0], [0], [1], [0, 0, 1, 1], [], []>} : vector<18x32xbf16>, vector<32x64xbf16>, vector<18x64xf32> -> vector<18x64xf32>
    %129 = arith.addf %121, %128 : vector<18x64xf32>
    %c15 = arith.constant 15 : index
    %c0_113 = arith.constant 0 : index
    %c0_114 = arith.constant 0 : index
    %130 = vector.load %arg4[%c15, %c0_113, %c0_114] : memref<16x18x128xbf16, #tpu.memory_space<vmem>>, vector<1x18x128xbf16>
    %131 = vector.shape_cast %130 : vector<1x18x128xbf16> to vector<18x128xbf16>
    %cst_115 = arith.constant dense<0.000000e+00> : vector<18x32xf32>
    %132 = tpu.matmul %131, %8, %cst_115 {dimension_numbers = #tpu.dot_dimension_numbers<[1], [0], [0], [1], [0, 0, 1, 1], [], []>} : vector<18x128xbf16>, vector<128x32xbf16>, vector<18x32xf32> -> vector<18x32xf32>
    %133 = arith.truncf %132 : vector<18x32xf32> to vector<18x32xbf16>
    %c15_116 = arith.constant 15 : index
    %c0_117 = arith.constant 0 : index
    %c0_118 = arith.constant 0 : index
    %134 = vector.load %arg5[%c15_116, %c0_117, %c0_118] : memref<16x32x64xbf16, #tpu.memory_space<vmem>>, vector<1x32x64xbf16>
    %135 = vector.shape_cast %134 : vector<1x32x64xbf16> to vector<32x64xbf16>
    %cst_119 = arith.constant dense<0.000000e+00> : vector<18x64xf32>
    %136 = tpu.matmul %133, %135, %cst_119 {dimension_numbers = #tpu.dot_dimension_numbers<[1], [0], [0], [1], [0, 0, 1, 1], [], []>} : vector<18x32xbf16>, vector<32x64xbf16>, vector<18x64xf32> -> vector<18x64xf32>
    %137 = arith.addf %129, %136 : vector<18x64xf32>
    %c0_120 = arith.constant 0 : index
    %c0_121 = arith.constant 0 : index
    %138 = vector.load %arg6[%c0_120, %c0_121] : memref<1x64xf32, #tpu.memory_space<vmem>>, vector<1x64xf32>
    %139 = vector.broadcast %138 : vector<1x64xf32> to vector<18x64xf32>
    %140 = arith.addf %137, %139 : vector<18x64xf32>
    %cst_122 = arith.constant 0.000000e+00 : f32
    %141 = vector.broadcast %cst_122 : f32 to vector<18x64xf32>
    %142 = arith.maximumf %140, %141 : vector<18x64xf32>
    %143 = arith.truncf %142 : vector<18x64xf32> to vector<18x64xbf16>
    %cst_123 = arith.constant 0.000000e+00 : f32
    %144 = vector.broadcast %cst_123 : f32 to vector<2x64xf32>
    %c0_124 = arith.constant 0 : index
    %c0_125 = arith.constant 0 : index
    %c0_126 = arith.constant 0 : index
    %145 = vector.load %arg7[%c0_124, %c0_125, %c0_126] : memref<9x2x18xbf16, #tpu.memory_space<vmem>>, vector<1x2x18xbf16>
    %146 = vector.shape_cast %145 : vector<1x2x18xbf16> to vector<2x18xbf16>
    %cst_127 = arith.constant dense<0.000000e+00> : vector<2x64xf32>
    %147 = tpu.matmul %146, %143, %cst_127 {dimension_numbers = #tpu.dot_dimension_numbers<[1], [0], [0], [1], [0, 0, 1, 1], [], []>} : vector<2x18xbf16>, vector<18x64xbf16>, vector<2x64xf32> -> vector<2x64xf32>
    %148 = arith.truncf %147 : vector<2x64xf32> to vector<2x64xbf16>
    %c0_128 = arith.constant 0 : index
    %c0_129 = arith.constant 0 : index
    %c0_130 = arith.constant 0 : index
    %149 = vector.load %arg8[%c0_128, %c0_129, %c0_130] : memref<9x64x64xbf16, #tpu.memory_space<vmem>>, vector<1x64x64xbf16>
    %150 = vector.shape_cast %149 : vector<1x64x64xbf16> to vector<64x64xbf16>
    %cst_131 = arith.constant dense<0.000000e+00> : vector<2x64xf32>
    %151 = tpu.matmul %148, %150, %cst_131 {dimension_numbers = #tpu.dot_dimension_numbers<[1], [0], [0], [1], [0, 0, 1, 1], [], []>} : vector<2x64xbf16>, vector<64x64xbf16>, vector<2x64xf32> -> vector<2x64xf32>
    %152 = arith.addf %144, %151 : vector<2x64xf32>
    %c1_132 = arith.constant 1 : index
    %c0_133 = arith.constant 0 : index
    %c0_134 = arith.constant 0 : index
    %153 = vector.load %arg7[%c1_132, %c0_133, %c0_134] : memref<9x2x18xbf16, #tpu.memory_space<vmem>>, vector<1x2x18xbf16>
    %154 = vector.shape_cast %153 : vector<1x2x18xbf16> to vector<2x18xbf16>
    %cst_135 = arith.constant dense<0.000000e+00> : vector<2x64xf32>
    %155 = tpu.matmul %154, %143, %cst_135 {dimension_numbers = #tpu.dot_dimension_numbers<[1], [0], [0], [1], [0, 0, 1, 1], [], []>} : vector<2x18xbf16>, vector<18x64xbf16>, vector<2x64xf32> -> vector<2x64xf32>
    %156 = arith.truncf %155 : vector<2x64xf32> to vector<2x64xbf16>
    %c1_136 = arith.constant 1 : index
    %c0_137 = arith.constant 0 : index
    %c0_138 = arith.constant 0 : index
    %157 = vector.load %arg8[%c1_136, %c0_137, %c0_138] : memref<9x64x64xbf16, #tpu.memory_space<vmem>>, vector<1x64x64xbf16>
    %158 = vector.shape_cast %157 : vector<1x64x64xbf16> to vector<64x64xbf16>
    %cst_139 = arith.constant dense<0.000000e+00> : vector<2x64xf32>
    %159 = tpu.matmul %156, %158, %cst_139 {dimension_numbers = #tpu.dot_dimension_numbers<[1], [0], [0], [1], [0, 0, 1, 1], [], []>} : vector<2x64xbf16>, vector<64x64xbf16>, vector<2x64xf32> -> vector<2x64xf32>
    %160 = arith.addf %152, %159 : vector<2x64xf32>
    %c2_140 = arith.constant 2 : index
    %c0_141 = arith.constant 0 : index
    %c0_142 = arith.constant 0 : index
    %161 = vector.load %arg7[%c2_140, %c0_141, %c0_142] : memref<9x2x18xbf16, #tpu.memory_space<vmem>>, vector<1x2x18xbf16>
    %162 = vector.shape_cast %161 : vector<1x2x18xbf16> to vector<2x18xbf16>
    %cst_143 = arith.constant dense<0.000000e+00> : vector<2x64xf32>
    %163 = tpu.matmul %162, %143, %cst_143 {dimension_numbers = #tpu.dot_dimension_numbers<[1], [0], [0], [1], [0, 0, 1, 1], [], []>} : vector<2x18xbf16>, vector<18x64xbf16>, vector<2x64xf32> -> vector<2x64xf32>
    %164 = arith.truncf %163 : vector<2x64xf32> to vector<2x64xbf16>
    %c2_144 = arith.constant 2 : index
    %c0_145 = arith.constant 0 : index
    %c0_146 = arith.constant 0 : index
    %165 = vector.load %arg8[%c2_144, %c0_145, %c0_146] : memref<9x64x64xbf16, #tpu.memory_space<vmem>>, vector<1x64x64xbf16>
    %166 = vector.shape_cast %165 : vector<1x64x64xbf16> to vector<64x64xbf16>
    %cst_147 = arith.constant dense<0.000000e+00> : vector<2x64xf32>
    %167 = tpu.matmul %164, %166, %cst_147 {dimension_numbers = #tpu.dot_dimension_numbers<[1], [0], [0], [1], [0, 0, 1, 1], [], []>} : vector<2x64xbf16>, vector<64x64xbf16>, vector<2x64xf32> -> vector<2x64xf32>
    %168 = arith.addf %160, %167 : vector<2x64xf32>
    %c3_148 = arith.constant 3 : index
    %c0_149 = arith.constant 0 : index
    %c0_150 = arith.constant 0 : index
    %169 = vector.load %arg7[%c3_148, %c0_149, %c0_150] : memref<9x2x18xbf16, #tpu.memory_space<vmem>>, vector<1x2x18xbf16>
    %170 = vector.shape_cast %169 : vector<1x2x18xbf16> to vector<2x18xbf16>
    %cst_151 = arith.constant dense<0.000000e+00> : vector<2x64xf32>
    %171 = tpu.matmul %170, %143, %cst_151 {dimension_numbers = #tpu.dot_dimension_numbers<[1], [0], [0], [1], [0, 0, 1, 1], [], []>} : vector<2x18xbf16>, vector<18x64xbf16>, vector<2x64xf32> -> vector<2x64xf32>
    %172 = arith.truncf %171 : vector<2x64xf32> to vector<2x64xbf16>
    %c3_152 = arith.constant 3 : index
    %c0_153 = arith.constant 0 : index
    %c0_154 = arith.constant 0 : index
    %173 = vector.load %arg8[%c3_152, %c0_153, %c0_154] : memref<9x64x64xbf16, #tpu.memory_space<vmem>>, vector<1x64x64xbf16>
    %174 = vector.shape_cast %173 : vector<1x64x64xbf16> to vector<64x64xbf16>
    %cst_155 = arith.constant dense<0.000000e+00> : vector<2x64xf32>
    %175 = tpu.matmul %172, %174, %cst_155 {dimension_numbers = #tpu.dot_dimension_numbers<[1], [0], [0], [1], [0, 0, 1, 1], [], []>} : vector<2x64xbf16>, vector<64x64xbf16>, vector<2x64xf32> -> vector<2x64xf32>
    %176 = arith.addf %168, %175 : vector<2x64xf32>
    %c4_156 = arith.constant 4 : index
    %c0_157 = arith.constant 0 : index
    %c0_158 = arith.constant 0 : index
    %177 = vector.load %arg7[%c4_156, %c0_157, %c0_158] : memref<9x2x18xbf16, #tpu.memory_space<vmem>>, vector<1x2x18xbf16>
    %178 = vector.shape_cast %177 : vector<1x2x18xbf16> to vector<2x18xbf16>
    %cst_159 = arith.constant dense<0.000000e+00> : vector<2x64xf32>
    %179 = tpu.matmul %178, %143, %cst_159 {dimension_numbers = #tpu.dot_dimension_numbers<[1], [0], [0], [1], [0, 0, 1, 1], [], []>} : vector<2x18xbf16>, vector<18x64xbf16>, vector<2x64xf32> -> vector<2x64xf32>
    %180 = arith.truncf %179 : vector<2x64xf32> to vector<2x64xbf16>
    %c4_160 = arith.constant 4 : index
    %c0_161 = arith.constant 0 : index
    %c0_162 = arith.constant 0 : index
    %181 = vector.load %arg8[%c4_160, %c0_161, %c0_162] : memref<9x64x64xbf16, #tpu.memory_space<vmem>>, vector<1x64x64xbf16>
    %182 = vector.shape_cast %181 : vector<1x64x64xbf16> to vector<64x64xbf16>
    %cst_163 = arith.constant dense<0.000000e+00> : vector<2x64xf32>
    %183 = tpu.matmul %180, %182, %cst_163 {dimension_numbers = #tpu.dot_dimension_numbers<[1], [0], [0], [1], [0, 0, 1, 1], [], []>} : vector<2x64xbf16>, vector<64x64xbf16>, vector<2x64xf32> -> vector<2x64xf32>
    %184 = arith.addf %176, %183 : vector<2x64xf32>
    %c5_164 = arith.constant 5 : index
    %c0_165 = arith.constant 0 : index
    %c0_166 = arith.constant 0 : index
    %185 = vector.load %arg7[%c5_164, %c0_165, %c0_166] : memref<9x2x18xbf16, #tpu.memory_space<vmem>>, vector<1x2x18xbf16>
    %186 = vector.shape_cast %185 : vector<1x2x18xbf16> to vector<2x18xbf16>
    %cst_167 = arith.constant dense<0.000000e+00> : vector<2x64xf32>
    %187 = tpu.matmul %186, %143, %cst_167 {dimension_numbers = #tpu.dot_dimension_numbers<[1], [0], [0], [1], [0, 0, 1, 1], [], []>} : vector<2x18xbf16>, vector<18x64xbf16>, vector<2x64xf32> -> vector<2x64xf32>
    %188 = arith.truncf %187 : vector<2x64xf32> to vector<2x64xbf16>
    %c5_168 = arith.constant 5 : index
    %c0_169 = arith.constant 0 : index
    %c0_170 = arith.constant 0 : index
    %189 = vector.load %arg8[%c5_168, %c0_169, %c0_170] : memref<9x64x64xbf16, #tpu.memory_space<vmem>>, vector<1x64x64xbf16>
    %190 = vector.shape_cast %189 : vector<1x64x64xbf16> to vector<64x64xbf16>
    %cst_171 = arith.constant dense<0.000000e+00> : vector<2x64xf32>
    %191 = tpu.matmul %188, %190, %cst_171 {dimension_numbers = #tpu.dot_dimension_numbers<[1], [0], [0], [1], [0, 0, 1, 1], [], []>} : vector<2x64xbf16>, vector<64x64xbf16>, vector<2x64xf32> -> vector<2x64xf32>
    %192 = arith.addf %184, %191 : vector<2x64xf32>
    %c6_172 = arith.constant 6 : index
    %c0_173 = arith.constant 0 : index
    %c0_174 = arith.constant 0 : index
    %193 = vector.load %arg7[%c6_172, %c0_173, %c0_174] : memref<9x2x18xbf16, #tpu.memory_space<vmem>>, vector<1x2x18xbf16>
    %194 = vector.shape_cast %193 : vector<1x2x18xbf16> to vector<2x18xbf16>
    %cst_175 = arith.constant dense<0.000000e+00> : vector<2x64xf32>
    %195 = tpu.matmul %194, %143, %cst_175 {dimension_numbers = #tpu.dot_dimension_numbers<[1], [0], [0], [1], [0, 0, 1, 1], [], []>} : vector<2x18xbf16>, vector<18x64xbf16>, vector<2x64xf32> -> vector<2x64xf32>
    %196 = arith.truncf %195 : vector<2x64xf32> to vector<2x64xbf16>
    %c6_176 = arith.constant 6 : index
    %c0_177 = arith.constant 0 : index
    %c0_178 = arith.constant 0 : index
    %197 = vector.load %arg8[%c6_176, %c0_177, %c0_178] : memref<9x64x64xbf16, #tpu.memory_space<vmem>>, vector<1x64x64xbf16>
    %198 = vector.shape_cast %197 : vector<1x64x64xbf16> to vector<64x64xbf16>
    %cst_179 = arith.constant dense<0.000000e+00> : vector<2x64xf32>
    %199 = tpu.matmul %196, %198, %cst_179 {dimension_numbers = #tpu.dot_dimension_numbers<[1], [0], [0], [1], [0, 0, 1, 1], [], []>} : vector<2x64xbf16>, vector<64x64xbf16>, vector<2x64xf32> -> vector<2x64xf32>
    %200 = arith.addf %192, %199 : vector<2x64xf32>
    %c7_180 = arith.constant 7 : index
    %c0_181 = arith.constant 0 : index
    %c0_182 = arith.constant 0 : index
    %201 = vector.load %arg7[%c7_180, %c0_181, %c0_182] : memref<9x2x18xbf16, #tpu.memory_space<vmem>>, vector<1x2x18xbf16>
    %202 = vector.shape_cast %201 : vector<1x2x18xbf16> to vector<2x18xbf16>
    %cst_183 = arith.constant dense<0.000000e+00> : vector<2x64xf32>
    %203 = tpu.matmul %202, %143, %cst_183 {dimension_numbers = #tpu.dot_dimension_numbers<[1], [0], [0], [1], [0, 0, 1, 1], [], []>} : vector<2x18xbf16>, vector<18x64xbf16>, vector<2x64xf32> -> vector<2x64xf32>
    %204 = arith.truncf %203 : vector<2x64xf32> to vector<2x64xbf16>
    %c7_184 = arith.constant 7 : index
    %c0_185 = arith.constant 0 : index
    %c0_186 = arith.constant 0 : index
    %205 = vector.load %arg8[%c7_184, %c0_185, %c0_186] : memref<9x64x64xbf16, #tpu.memory_space<vmem>>, vector<1x64x64xbf16>
    %206 = vector.shape_cast %205 : vector<1x64x64xbf16> to vector<64x64xbf16>
    %cst_187 = arith.constant dense<0.000000e+00> : vector<2x64xf32>
    %207 = tpu.matmul %204, %206, %cst_187 {dimension_numbers = #tpu.dot_dimension_numbers<[1], [0], [0], [1], [0, 0, 1, 1], [], []>} : vector<2x64xbf16>, vector<64x64xbf16>, vector<2x64xf32> -> vector<2x64xf32>
    %208 = arith.addf %200, %207 : vector<2x64xf32>
    %c8_188 = arith.constant 8 : index
    %c0_189 = arith.constant 0 : index
    %c0_190 = arith.constant 0 : index
    %209 = vector.load %arg7[%c8_188, %c0_189, %c0_190] : memref<9x2x18xbf16, #tpu.memory_space<vmem>>, vector<1x2x18xbf16>
    %210 = vector.shape_cast %209 : vector<1x2x18xbf16> to vector<2x18xbf16>
    %cst_191 = arith.constant dense<0.000000e+00> : vector<2x64xf32>
    %211 = tpu.matmul %210, %143, %cst_191 {dimension_numbers = #tpu.dot_dimension_numbers<[1], [0], [0], [1], [0, 0, 1, 1], [], []>} : vector<2x18xbf16>, vector<18x64xbf16>, vector<2x64xf32> -> vector<2x64xf32>
    %212 = arith.truncf %211 : vector<2x64xf32> to vector<2x64xbf16>
    %c8_192 = arith.constant 8 : index
    %c0_193 = arith.constant 0 : index
    %c0_194 = arith.constant 0 : index
    %213 = vector.load %arg8[%c8_192, %c0_193, %c0_194] : memref<9x64x64xbf16, #tpu.memory_space<vmem>>, vector<1x64x64xbf16>
    %214 = vector.shape_cast %213 : vector<1x64x64xbf16> to vector<64x64xbf16>
    %cst_195 = arith.constant dense<0.000000e+00> : vector<2x64xf32>
    %215 = tpu.matmul %212, %214, %cst_195 {dimension_numbers = #tpu.dot_dimension_numbers<[1], [0], [0], [1], [0, 0, 1, 1], [], []>} : vector<2x64xbf16>, vector<64x64xbf16>, vector<2x64xf32> -> vector<2x64xf32>
    %216 = arith.addf %208, %215 : vector<2x64xf32>
    %c0_196 = arith.constant 0 : index
    %c0_197 = arith.constant 0 : index
    %217 = vector.load %arg9[%c0_196, %c0_197] : memref<1x64xf32, #tpu.memory_space<vmem>>, vector<1x64xf32>
    %218 = vector.broadcast %217 : vector<1x64xf32> to vector<2x64xf32>
    %219 = arith.addf %216, %218 : vector<2x64xf32>
    %cst_198 = arith.constant 0.000000e+00 : f32
    %220 = vector.broadcast %cst_198 : f32 to vector<2x64xf32>
    %221 = arith.maximumf %219, %220 : vector<2x64xf32>
    %c0_199 = arith.constant 0 : index
    %c0_200 = arith.constant 0 : index
    %222 = vector.load %arg10[%c0_199, %c0_200] : memref<2x64xf32, #tpu.memory_space<vmem>>, vector<2x64xf32>
    tpu.vector_store %arg10[%c0_199, %c0_200], %221 {strides = array<i32>} : memref<2x64xf32, #tpu.memory_space<vmem>>, vector<2x64xf32>,
    return
  }
  func.func @transform_0(%arg0: i32) -> (i32, i32) {
    %c0_i32 = arith.constant 0 : i32
    %c0_i32_0 = arith.constant 0 : i32
    %c0_i32_1 = arith.constant 0 : i32
    return %c0_i32, %c0_i32_0 : i32, i32
  }
  func.func @transform_1(%arg0: i32) -> (i32, i32) {
    %c0_i32 = arith.constant 0 : i32
    %c0_i32_0 = arith.constant 0 : i32
    %c0_i32_1 = arith.constant 0 : i32
    return %c0_i32, %c0_i32_0 : i32, i32
  }
  func.func @transform_2(%arg0: i32) -> (i32, i32) {
    %c0_i32 = arith.constant 0 : i32
    %c0_i32_0 = arith.constant 0 : i32
    %c0_i32_1 = arith.constant 0 : i32
    return %c0_i32, %c0_i32_0 : i32, i32
  }
  func.func @transform_3(%arg0: i32) -> (i32, i32, i32) {
    %c0_i32 = arith.constant 0 : i32
    %c0_i32_0 = arith.constant 0 : i32
    %c0_i32_1 = arith.constant 0 : i32
    %c0_i32_2 = arith.constant 0 : i32
    return %c0_i32, %c0_i32_0, %c0_i32_1 : i32, i32, i32
  }
  func.func @transform_4(%arg0: i32) -> (i32, i32, i32) {
    %c0_i32 = arith.constant 0 : i32
    %c0_i32_0 = arith.constant 0 : i32
    %c0_i32_1 = arith.constant 0 : i32
    %c0_i32_2 = arith.constant 0 : i32
    return %c0_i32, %c0_i32_0, %c0_i32_1 : i32, i32, i32
  }
  func.func @transform_5(%arg0: i32) -> (i32, i32) {
    %c0_i32 = arith.constant 0 : i32
    %c0_i32_0 = arith.constant 0 : i32
    %c0_i32_1 = arith.constant 0 : i32
    return %c0_i32, %c0_i32_0 : i32, i32
  }
  func.func @transform_6(%arg0: i32) -> (i32, i32, i32) {
    %c0_i32 = arith.constant 0 : i32
    %c0_i32_0 = arith.constant 0 : i32
    %c0_i32_1 = arith.constant 0 : i32
    %c0_i32_2 = arith.constant 0 : i32
    return %c0_i32, %c0_i32_0, %c0_i32_1 : i32, i32, i32
  }
  func.func @transform_7(%arg0: i32) -> (i32, i32, i32) {
    %c0_i32 = arith.constant 0 : i32
    %c0_i32_0 = arith.constant 0 : i32
    %c0_i32_1 = arith.constant 0 : i32
    %c0_i32_2 = arith.constant 0 : i32
    return %c0_i32, %c0_i32_0, %c0_i32_1 : i32, i32, i32
  }
  func.func @transform_8(%arg0: i32) -> (i32, i32) {
    %c0_i32 = arith.constant 0 : i32
    %c0_i32_0 = arith.constant 0 : i32
    %c0_i32_1 = arith.constant 0 : i32
    return %c0_i32, %c0_i32_0 : i32, i32
  }
  func.func @transform_9(%arg0: i32) -> (i32, i32) {
    %c0_i32 = arith.constant 0 : i32
    %c0_i32_0 = arith.constant 0 : i32
    %c0_i32_1 = arith.constant 0 : i32
    return %c0_i32, %c0_i32_0 : i32, i32
  }
}

</mosaic_0001>

<bundles_post_ra>
// kernel: atari_body_forward.1
= control target key start
LH: loop header
LB: loop body
LE: loop exit
PB: predicated region body
PF: predicated region fallthrough
CT: control target
= control target key end

     0   :  { %s6202_s0 = inlined_call_operand.vmem [shape: bf16[128,256], index: 0, kind: input, shape index: {}]   ;;  %s6203_s1 = inlined_call_operand.vmem [shape: bf16[256,32], index: 1, kind: input, shape index: {}]   ;;  %s6204_s2 = inlined_call_operand.vmem [shape: f32[1,32], index: 2, kind: input, shape index: {}]   ;;  %s6205_s3 = inlined_call_operand.vmem [shape: bf16[16,18,128], index: 3, kind: input, shape index: {}]   ;;  %s6206_s4 = inlined_call_operand.vmem [shape: bf16[16,32,64], index: 4, kind: input, shape index: {}]   ;;  %s6207_s5 = inlined_call_operand.vmem [shape: f32[1,64], index: 5, kind: input, shape index: {}]   ;;  %s6208_s6 = inlined_call_operand.vmem [shape: bf16[9,2,18], index: 6, kind: input, shape index: {}]   ;;  %s6209_s7 = inlined_call_operand.vmem [shape: bf16[9,64,64], index: 7, kind: input, shape index: {}]   ;;  %s6210_s8 = inlined_call_operand.vmem [shape: f32[1,64], index: 8, kind: input, shape index: {}]   ;;  %s6211_s9 = inlined_call_operand.hbm [shape: f32[2,64], index: 9, kind: output, shape index: {}]  }
   0x1   :  { %v5089_v0 = vld [vmem:[%s6203_s1 + $0x40] sm:$0xff]   ;;  %v5091_v2 = vld [vmem:[%s6203_s1 + $0x48] sm:$0xff]   ;;  %v5093_v4 = vld [vmem:[%s6203_s1 + $0x50] sm:$0xff]  }
   0x2   :  { %v5090_v1 = vld [vmem:[%s6203_s1] sm:$0xff]   ;;  %4098 = vmatprep.subr.bf16.mxu0 %v5089_v0  ;;  %v5092_v3 = vld [vmem:[%s6203_s1 + $0x8] sm:$0xff]   ;;  %v5094_v5 = vld [vmem:[%s6203_s1 + $0x10] sm:$0xff]  }
   0x3   :  { %4099 = vmatpush3.bf16.msra.mxu0 %v5090_v1  ;;  %v5095_v6 = vld [vmem:[%s6203_s1 + $0x58] sm:$0xff]   ;;  %v5097_v8 = vld [vmem:[%s6203_s1 + $0x60] sm:$0xff]   ;;  %v5099_v10 = vld [vmem:[%s6203_s1 + $0x68] sm:$0xff]  }
   0x4   :  { %4100 = vmatprep.subr.bf16.mxu0 %v5091_v2  ;;  %v5096_v7 = vld [vmem:[%s6203_s1 + $0x18] sm:$0xff]   ;;  %v5098_v9 = vld [vmem:[%s6203_s1 + $0x20] sm:$0xff]   ;;  %v5100_v12 = vld [vmem:[%s6203_s1 + $0x28] sm:$0xff]  }
   0x5   :  { %v5107_v11 = vld [vmem:[%s6202_s0 + $0x4] ss:$8 sps:$4 sm:$0xff]   ;;  %v5101_v13 = vld [vmem:[%s6203_s1 + $0x70] sm:$0xff]   ;;  %v5103_v15 = vld [vmem:[%s6203_s1 + $0x78] sm:$0xff]  }
   0x6   :  { %297 = vmatprep.mubr.bf16.mxu0 %v5107_v11  ;;  %v5102_v14 = vld [vmem:[%s6203_s1 + $0x30] sm:$0xff]   ;;  %v5104_v16 = vld [vmem:[%s6203_s1 + $0x38] sm:$0xff]   ;;  %v5105_v17 = vld [vmem:[%s6202_s0] ss:$8 sps:$4 sm:$0xff]  }
   0x7   :  { %4101 = vmatpush3.bf16.msra.mxu0 %v5092_v3  ;;  %v5108_v18 = vld [vmem:[%s6202_s0 + $0x14] ss:$8 sps:$4 sm:$0xff]   ;;  %v5110_v19 = vld [vmem:[%s6202_s0 + $0x10] ss:$8 sps:$4 sm:$0xff]   ;;  %v5111_v20 = vld [vmem:[%s6202_s0 + $0x24] ss:$8 sps:$4 sm:$0xff]  }
   0x8   :  { %4102 = vmatprep.subr.bf16.mxu0 %v5093_v4  ;;  %v5113_v21 = vld [vmem:[%s6202_s0 + $0x20] ss:$8 sps:$4 sm:$0xff]   ;;  %v5114_v22 = vld [vmem:[%s6202_s0 + $0x34] ss:$8 sps:$4 sm:$0xff]   ;;  %v5116_v23 = vld [vmem:[%s6202_s0 + $0x30] ss:$8 sps:$4 sm:$0xff]  }
   0x9   :  { %v5117_v24 = vld [vmem:[%s6202_s0 + $0x44] ss:$8 sps:$4 sm:$0xff]   ;;  %v5119_v25 = vld [vmem:[%s6202_s0 + $0x40] ss:$8 sps:$4 sm:$0xff]   ;;  %v5120_v26 = vld [vmem:[%s6202_s0 + $0x54] ss:$8 sps:$4 sm:$0xff]  }
   0xa   :  { %v5122_v27 = vld [vmem:[%s6202_s0 + $0x50] ss:$8 sps:$4 sm:$0xff]   ;;  %v5123_v28 = vld [vmem:[%s6202_s0 + $0x64] ss:$8 sps:$4 sm:$0xff]   ;;  %v5125_v29 = vld [vmem:[%s6202_s0 + $0x60] ss:$8 sps:$4 sm:$0xff]  }
   0xb   :  { %4103 = vmatpush3.bf16.msra.mxu0 %v5094_v5  ;;  %v5126_v30 = vld [vmem:[%s6202_s0 + $0x74] ss:$8 sps:$4 sm:$0xff]   ;;  %v5128_v31 = vld [vmem:[%s6202_s0 + $0x70] ss:$8 sps:$4 sm:$0xff]  }
   0xc   :  { %4104 = vmatprep.subr.bf16.mxu0 %v5095_v6 }
   0xf   :  { %4105 = vmatpush3.bf16.msra.mxu0 %v5096_v7 }
  0x10   :  { %4106 = vmatprep.subr.bf16.mxu0 %v5097_v8 }
  0x13   :  { %4107 = vmatpush3.bf16.msra.mxu0 %v5098_v9 }
  0x14   :  { %4108 = vmatprep.subr.bf16.mxu0 %v5099_v10 }
  0x17   :  { %4109 = vmatpush3.bf16.msra.mxu0 %v5100_v12 }
  0x18   :  { %4110 = vmatprep.subr.bf16.mxu0 %v5101_v13 }
  0x1b   :  { %4111 = vmatpush3.bf16.msra.mxu0 %v5102_v14 }
  0x1c   :  { %4112 = vmatprep.subr.bf16.mxu0 %v5103_v15 }
  0x1f   :  { %4113 = vmatpush3.bf16.msra.mxu0 %v5104_v16 }
  0x22   :  { %298 = vmatmul.mubr.bf16.vlgmr.msra.gmra.mrb[0].mxu0 %v5105_v17 }
  0x23   :  { %305 = vmatprep.mubr.bf16.mxu0 %v5108_v18 }
  0x2a   :  { %306 = vmatmul.mubr.bf16.gmra.mrb[4].mxu0 %v5110_v19 }
  0x2b   :  { %313 = vmatprep.mubr.bf16.mxu0 %v5111_v20 }
  0x32   :  { %314 = vmatmul.mubr.bf16.gmra.mrb[8].mxu0 %v5113_v21 }
  0x33   :  { %321 = vmatprep.mubr.bf16.mxu0 %v5114_v22 }
  0x3a   :  { %322 = vmatmul.mubr.bf16.gmra.mrb[12].mxu0 %v5116_v23 }
  0x3b   :  { %329 = vmatprep.mubr.bf16.mxu0 %v5117_v24 }
  0x42   :  { %330 = vmatmul.mubr.bf16.gmra.mrb[16].mxu0 %v5119_v25 }
  0x43   :  { %337 = vmatprep.mubr.bf16.mxu0 %v5120_v26 }
  0x4a   :  { %338 = vmatmul.mubr.bf16.gmra.mrb[20].mxu0 %v5122_v27 }
  0x4b   :  { %345 = vmatprep.mubr.bf16.mxu0 %v5123_v28 }
  0x52   :  { %346 = vmatmul.mubr.bf16.gmra.mrb[24].mxu0 %v5125_v29 }
  0x53   :  { %353 = vmatprep.mubr.bf16.mxu0 %v5126_v30 }
  0x54   :  { %14 = vsyncpa [#allocation3], 0  ;;  %v5129_v32 = vld [vmem:[%s6205_s3] sm:$0xff]   ;;  %v5131_v33 = vld [vmem:[%s6205_s3 + $0x18] sm:$0xff]   ;;  %vm534_vm0 = vcmask 261120   ;;  %vm5254_vm1 = vmmov 0  }
  0x55   :  { %4474 = vmatprep.mubr.bf16.mxu1 %v5129_v32  ;;  %v5411_v35 = vld [vmem:[%s6204_s2] ss:$0 sm:$0xff]  ;;  %vm2607_vm2 = vcmask 1040384   ;;  %vm2603_vm3 = vcmask 146432   ;;  %vm2739_vm4 = vcmask 523264   ;;  %s5255_s24 = smov [#allocation2]  }
  0x56   :  { %s3728_s25 = sshll.u32 %s5255_s24, 4  ;;  %vm3720_vm5 = vcmask 517120   ;;  %s3729_s25 = int_to_ptr.vmem [resolvable:$true] %s3728_s25 }
  0x57   :  { %s5229_s26 = scalar_lea.vmem %s3729_s25, 32  ;;  %p5234_p1 = scmp.lt.s32.totalorder %s3729_s25, %s3729_s25 }
  0x58   :  { %p5230_p0 = scmp.ne.s32.totalorder %s3729_s25, %s5229_s26  ;;  %p5235_p2 = scmp.lt.s32.totalorder %s5229_s26, %s5229_s26 }
  0x5a   :  { %354 = vmatmul.mubr.bf16.gmra.mrb[28].mxu0 %v5128_v31  ;;  %p5236_p3 = por %p5235_p2, %p5234_p1 }
  0x5b   :  { %4530 = vmatprep.mubr.bf16.mxu0 %v5131_v33 }
  0x5c   :  { %p5237_p4 = pnand %p5236_p3, %p5230_p0 }
  0xf5   :  { %v4114_v34 = vpop.f32.mrb[0].mxu0 }
  0xf6   :  { %v4115_v36 = vpop.f32.mrb[1].mxu0 }
  0xf7   :  { %v4116_v37 = vadd.f32 %v4115_v36, %v4114_v34  ;;  %v4117_v38 = vpop.f32.mrb[2].mxu0 }
  0xf8   :  { %v4118_v39 = vpop.f32.mrb[3].mxu0 }
  0xf9   :  { %v300_v40 = vadd.f32 %v4116_v37, %v5411_v35  ;;  %v4119_v41 = vadd.f32 %v4118_v39, %v4117_v38 }
  0xfb   :  { %v303_v42 = vadd.f32 %v4119_v41, %v5411_v35  ;;  %v362_v43 = vmax.f32 %v300_v40, 0.0 }
  0xfd   :  { %v363_v44 = vmax.f32 %v303_v42, 0.0  ;;  %v4120_v45 = vpop.f32.mrb[4].mxu0 }
  0xfe   :  { %v4121_v46 = vpop.f32.mrb[5].mxu0 }
  0xff   :  { %v5415_v47 = vpack.c.bf16 %v363_v44, %v362_v43  ;;  %v4122_v48 = vadd.f32 %v4121_v46, %v4120_v45  ;;  %v4123_v49 = vpop.f32.mrb[6].mxu0 }
 0x100   :  { %v4124_v50 = vpop.f32.mrb[7].mxu0 }
 0x101   :  { %v308_v51 = vadd.f32 %v4122_v48, %v5411_v35  ;;  %v4125_v52 = vadd.f32 %v4124_v50, %v4123_v49  ;;  %4458 = vmatprep.subr.bf16.mxu1 %v5415_v47  ;;  %4514 = vmatprep.subr.bf16.mxu0 %v5415_v47 }
 0x102   :  { %4459 = vmatpush3.bf16.msra.mxu1 %v5415_v47  ;;  %4515 = vmatpush3.bf16.msra.mxu0 %v5415_v47 }
 0x103   :  { %v311_v53 = vadd.f32 %v4125_v52, %v5411_v35  ;;  %v364_v54 = vmax.f32 %v308_v51, 0.0 }
 0x105   :  { %v365_v55 = vmax.f32 %v311_v53, 0.0  ;;  %v4126_v56 = vpop.f32.mrb[8].mxu0 }
 0x106   :  { %v4127_v57 = vpop.f32.mrb[9].mxu0 }
 0x107   :  { %v5423_v58 = vpack.c.bf16 %v365_v55, %v364_v54  ;;  %v4128_v59 = vadd.f32 %v4127_v57, %v4126_v56  ;;  %v4129_v60 = vpop.f32.mrb[10].mxu0 }
 0x108   :  { %v4130_v61 = vpop.f32.mrb[11].mxu0 }
 0x109   :  { %v316_v62 = vadd.f32 %v4128_v59, %v5411_v35  ;;  %v4131_v63 = vadd.f32 %v4130_v61, %v4129_v60  ;;  %4460 = vmatprep.subr.bf16.mxu1 %v5423_v58  ;;  %4516 = vmatprep.subr.bf16.mxu0 %v5423_v58 }
 0x10a   :  { %4461 = vmatpush3.bf16.msra.mxu1 %v5423_v58  ;;  %4517 = vmatpush3.bf16.msra.mxu0 %v5423_v58 }
 0x10b   :  { %v319_v0 = vadd.f32 %v4131_v63, %v5411_v35  ;;  %v366_v1 = vmax.f32 %v316_v62, 0.0  ;;  %v5132_v62 = vld [vmem:[%s6206_s4 + $0x30] sm:$0xff]   ;;  %v5130_v63 = vld [vmem:[%s6205_s3 + $0x8] ss:$0 sps:$4 sm:$0x11]  }
 0x10d   :  { %v367_v2 = vmax.f32 %v319_v0, 0.0  ;;  %v4132_v3 = vpop.f32.mrb[12].mxu0  ;;  %v5134_v0 = vld [vmem:[%s6206_s4 + $0x38] sm:$0xff]  }
 0x10e   :  { %v4133_v4 = vpop.f32.mrb[13].mxu0 }
 0x10f   :  { %v5431_v5 = vpack.c.bf16 %v367_v2, %v366_v1  ;;  %v4134_v6 = vadd.f32 %v4133_v4, %v4132_v3  ;;  %v4135_v7 = vpop.f32.mrb[14].mxu0  ;;  %v5135_v1 = vld [vmem:[%s6205_s3 + $0xc] sm:$0xff]   ;;  %v5136_v2 = vld [vmem:[%s6205_s3 + $0x14] ss:$0 sps:$4 sm:$0x11]   ;;  %v5138_v4 = vld [vmem:[%s6206_s4 + $0x18] sm:$0xff]  }
 0x110   :  { %v4136_v8 = vpop.f32.mrb[15].mxu0  ;;  %v5137_v3 = vld [vmem:[%s6206_s4 + $0x10] sm:$0xff]  }
 0x111   :  { %v324_v9 = vadd.f32 %v4134_v6, %v5411_v35  ;;  %v4137_v10 = vadd.f32 %v4136_v8, %v4135_v7  ;;  %4462 = vmatprep.subr.bf16.mxu1 %v5431_v5  ;;  %4518 = vmatprep.subr.bf16.mxu0 %v5431_v5  ;;  %v5139_v6 = vld [vmem:[%s6206_s4] sm:$0xff]  }
 0x112   :  { %4463 = vmatpush3.bf16.msra.mxu1 %v5431_v5  ;;  %4519 = vmatpush3.bf16.msra.mxu0 %v5431_v5 }
 0x113   :  { %v327_v11 = vadd.f32 %v4137_v10, %v5411_v35  ;;  %v368_v12 = vmax.f32 %v324_v9, 0.0 }
 0x115   :  { %v369_v13 = vmax.f32 %v327_v11, 0.0  ;;  %v4138_v14 = vpop.f32.mrb[16].mxu0 }
 0x116   :  { %v4139_v15 = vpop.f32.mrb[17].mxu0 }
 0x117   :  { %v5439_v16 = vpack.c.bf16 %v369_v13, %v368_v12  ;;  %v4140_v17 = vadd.f32 %v4139_v15, %v4138_v14  ;;  %v4141_v18 = vpop.f32.mrb[18].mxu0 }
 0x118   :  { %v4142_v19 = vpop.f32.mrb[19].mxu0 }
 0x119   :  { %v332_v20 = vadd.f32 %v4140_v17, %v5411_v35  ;;  %v4143_v21 = vadd.f32 %v4142_v19, %v4141_v18  ;;  %4464 = vmatprep.subr.bf16.mxu1 %v5439_v16  ;;  %4520 = vmatprep.subr.bf16.mxu0 %v5439_v16 }
 0x11a   :  { %4465 = vmatpush3.bf16.msra.mxu1 %v5439_v16  ;;  %4521 = vmatpush3.bf16.msra.mxu0 %v5439_v16 }
 0x11b   :  { %v335_v22 = vadd.f32 %v4143_v21, %v5411_v35  ;;  %v370_v23 = vmax.f32 %v332_v20, 0.0 }
 0x11d   :  { %v371_v24 = vmax.f32 %v335_v22, 0.0  ;;  %v4144_v25 = vpop.f32.mrb[20].mxu0 }
 0x11e   :  { %v4145_v26 = vpop.f32.mrb[21].mxu0 }
 0x11f   :  { %v5447_v27 = vpack.c.bf16 %v371_v24, %v370_v23  ;;  %v4146_v28 = vadd.f32 %v4145_v26, %v4144_v25  ;;  %v4147_v29 = vpop.f32.mrb[22].mxu0  ;;  %v5140_v24 = vld [vmem:[%s6206_s4 + $0x8] sm:$0xff]   ;;  %v5141_v25 = vld [vmem:[%s6206_s4 + $0x20] sm:$0xff]  }
 0x120   :  { %v4148_v30 = vpop.f32.mrb[23].mxu0 }
 0x121   :  { %v340_v31 = vadd.f32 %v4146_v28, %v5411_v35  ;;  %v4149_v32 = vadd.f32 %v4148_v30, %v4147_v29  ;;  %4466 = vmatprep.subr.bf16.mxu1 %v5447_v27  ;;  %4522 = vmatprep.subr.bf16.mxu0 %v5447_v27  ;;  %v5142_v28 = vld [vmem:[%s6206_s4 + $0x28] sm:$0xff]  }
 0x122   :  { %4467 = vmatpush3.bf16.msra.mxu1 %v5447_v27  ;;  %4523 = vmatpush3.bf16.msra.mxu0 %v5447_v27  ;;  %v5143_v29 = vld [vmem:[%s6205_s3 + $0x24] sm:$0xff]  }
 0x123   :  { %v343_v33 = vadd.f32 %v4149_v32, %v5411_v35  ;;  %v372_v34 = vmax.f32 %v340_v31, 0.0  ;;  %v5145_v31 = vld [vmem:[%s6206_s4 + $0x40] sm:$0xff]   ;;  %v5144_v32 = vld [vmem:[%s6205_s3 + $0x2c] ss:$0 sps:$4 sm:$0x11]  }
 0x125   :  { %v373_v36 = vmax.f32 %v343_v33, 0.0  ;;  %v4150_v37 = vpop.f32.mrb[24].mxu0  ;;  %v5146_v33 = vld [vmem:[%s6206_s4 + $0x48] sm:$0xff]  }
 0x126   :  { %v4151_v38 = vpop.f32.mrb[25].mxu0 }
 0x127   :  { %v5455_v39 = vpack.c.bf16 %v373_v36, %v372_v34  ;;  %v4152_v40 = vadd.f32 %v4151_v38, %v4150_v37  ;;  %v4153_v41 = vpop.f32.mrb[26].mxu0 }
 0x128   :  { %v4154_v42 = vpop.f32.mrb[27].mxu0 }
 0x129   :  { %v348_v43 = vadd.f32 %v4152_v40, %v5411_v35  ;;  %v4155_v44 = vadd.f32 %v4154_v42, %v4153_v41  ;;  %4468 = vmatprep.subr.bf16.mxu1 %v5455_v39  ;;  %4524 = vmatprep.subr.bf16.mxu0 %v5455_v39 }
 0x12a   :  { %4469 = vmatpush3.bf16.msra.mxu1 %v5455_v39  ;;  %4525 = vmatpush3.bf16.msra.mxu0 %v5455_v39 }
 0x12b   :  { %v351_v45 = vadd.f32 %v4155_v44, %v5411_v35  ;;  %v374_v46 = vmax.f32 %v348_v43, 0.0 }
 0x12d   :  { %v375_v48 = vmax.f32 %v351_v45, 0.0  ;;  %v4156_v49 = vpop.f32.mrb[28].mxu0 }
 0x12e   :  { %v4157_v50 = vpop.f32.mrb[29].mxu0 }
 0x12f   :  { %v5463_v51 = vpack.c.bf16 %v375_v48, %v374_v46  ;;  %v4158_v52 = vadd.f32 %v4157_v50, %v4156_v49  ;;  %v4159_v53 = vpop.f32.mrb[30].mxu0 }
 0x130   :  { %v4160_v54 = vpop.f32.mrb[31].mxu0 }
 0x131   :  { %v356_v55 = vadd.f32 %v4158_v52, %v5411_v35  ;;  %v4161_v56 = vadd.f32 %v4160_v54, %v4159_v53  ;;  %4470 = vmatprep.subr.bf16.mxu1 %v5463_v51  ;;  %4526 = vmatprep.subr.bf16.mxu0 %v5463_v51 }
 0x132   :  { %4471 = vmatpush3.bf16.msra.mxu1 %v5463_v51  ;;  %4527 = vmatpush3.bf16.msra.mxu0 %v5463_v51 }
 0x133   :  { %v359_v57 = vadd.f32 %v4161_v56, %v5411_v35  ;;  %v376_v59 = vmax.f32 %v356_v55, 0.0  ;;  %v5133_v35 = vld [vmem:[%s6205_s3 + $0x20] ss:$0 sps:$4 sm:$0x11]  }
 0x135   :  { %v377_v60 = vmax.f32 %v359_v57, 0.0 }
 0x137   :  { %v5471_v61 = vpack.c.bf16 %v377_v60, %v376_v59 }
 0x139   :  { %4472 = vmatprep.subr.bf16.mxu1 %v5471_v61  ;;  %4528 = vmatprep.subr.bf16.mxu0 %v5471_v61 }
 0x13a   :  { %4473 = vmatpush3.bf16.msra.mxu1 %v5471_v61  ;;  %4529 = vmatpush3.bf16.msra.mxu0 %v5471_v61 }
 0x13b   :  { %4478 = vmatprep.subr.bf16.mxu1 %v5415_v47  ;;  %4562 = vmatprep.subr.bf16.mxu0 %v5132_v62 }
 0x13d   :  { %4475 = vmatmul.mubr.bf16.vlgmr.msra.gmra.mrb[0].mxu1 %v5130_v63  ;;  %4531 = vmatmul.mubr.bf16.vlgmr.msra.gmra.mrb[32].mxu0 %v5133_v35  ;;  %v5147_v63 = vld [vmem:[%s6205_s3 + $0x30] sm:$0xff]  }
 0x13e   :  { %4479 = vmatpush3.bf16.msra.mxu1 %v5415_v47  ;;  %4563 = vmatpush3.bf16.msra.mxu0 %v5132_v62 }
 0x13f   :  { %4480 = vmatprep.subr.bf16.mxu1 %v5423_v58  ;;  %4564 = vmatprep.subr.bf16.mxu0 %v5134_v0 }
 0x140   :  { %4494 = vmatprep.mubr.bf16.mxu1 %v5135_v1  ;;  %v5148_v1 = vld [vmem:[%s6205_s3 + $0x38] ss:$0 sps:$4 sm:$0x11]  }
 0x142   :  { %4481 = vmatpush3.bf16.msra.mxu1 %v5423_v58  ;;  %4565 = vmatpush3.bf16.msra.mxu0 %v5134_v0  ;;  %v5149_v0 = vld [vmem:[%s6206_s4 + $0x50] sm:$0xff]  }
 0x143   :  { %4482 = vmatprep.subr.bf16.mxu1 %v5431_v5  ;;  %4570 = vmatprep.subr.bf16.mxu0 %v5415_v47 }
 0x146   :  { %4483 = vmatpush3.bf16.msra.mxu1 %v5431_v5 }
 0x147   :  { %4484 = vmatprep.subr.bf16.mxu1 %v5439_v16 }
 0x14a   :  { %4485 = vmatpush3.bf16.msra.mxu1 %v5439_v16 }
 0x14b   :  { %4486 = vmatprep.subr.bf16.mxu1 %v5447_v27 }
 0x14e   :  { %4487 = vmatpush3.bf16.msra.mxu1 %v5447_v27 }
 0x14f   :  { %4488 = vmatprep.subr.bf16.mxu1 %v5455_v39 }
 0x152   :  { %4489 = vmatpush3.bf16.msra.mxu1 %v5455_v39 }
 0x153   :  { %4490 = vmatprep.subr.bf16.mxu1 %v5463_v51 }
 0x156   :  { %4491 = vmatpush3.bf16.msra.mxu1 %v5463_v51 }
 0x157   :  { %4492 = vmatprep.subr.bf16.mxu1 %v5471_v61 }
 0x15a   :  { %4493 = vmatpush3.bf16.msra.mxu1 %v5471_v61 }
 0x15b   :  { %4498 = vmatprep.subr.bf16.mxu1 %v5137_v3 }
 0x15d   :  { %4495 = vmatmul.mubr.bf16.vlgmr.msra.gmra.mrb[4].mxu1 %v5136_v2  ;;  %v5150_v2 = vld [vmem:[%s6206_s4 + $0x58] sm:$0xff]  }
 0x15e   :  { %4499 = vmatpush3.bf16.msra.mxu1 %v5137_v3 }
 0x15f   :  { %4500 = vmatprep.subr.bf16.mxu1 %v5138_v4 }
 0x162   :  { %4501 = vmatpush3.bf16.msra.mxu1 %v5138_v4 }
 0x163   :  { %4506 = vmatprep.subr.bf16.mxu1 %v5139_v6 }
 0x210   :  { %v4476_v7 = vpop.f32.mrb[0].mxu1  ;;  %v4532_v8 = vpop.f32.mrb[32].mxu0 }
 0x211   :  { %v433_v9 = vpop.f32.mrb[1].mxu1  ;;  %v703_v10 = vpop.f32.mrb[33].mxu0  ;;  %v448_v26 = vpack.c.bf16 %v4476_v7, %v4476_v7  ;;  %v718_v30 = vpack.c.bf16 %v4532_v8, %v4532_v8 }
 0x212   :  { %v4477_v11 = vpop.f32.mrb[2].mxu1  ;;  %v4533_v12 = vpop.f32.mrb[34].mxu0 }
 0x213   :  { %v436_v13 = vpop.f32.mrb[3].mxu1  ;;  %v706_v14 = vpop.f32.mrb[35].mxu0 }
 0x214   :  { %v447_v15 = vpack.c.bf16 %v436_v13, %v433_v9  ;;  %v717_v17 = vpack.c.bf16 %v706_v14, %v703_v10 }
 0x230   :  { %v4496_v18 = vpop.f32.mrb[4].mxu1 }
 0x231   :  { %v501_v19 = vpop.f32.mrb[5].mxu1  ;;  %v516_v23 = vpack.c.bf16 %v4496_v18, %v4496_v18 }
 0x232   :  { %v4497_v20 = vpop.f32.mrb[6].mxu1 }
 0x233   :  { %v504_v21 = vpop.f32.mrb[7].mxu1  ;;  %v5152_v20 = vld [vmem:[%s6205_s3 + $0x44] ss:$0 sps:$4 sm:$0x11]  }
 0x234   :  { %v515_v22 = vpack.c.bf16 %v504_v21, %v501_v19  ;;  %v5153_v19 = vld [vmem:[%s6206_s4 + $0x60] sm:$0xff]   ;;  %v5154_v21 = vld [vmem:[%s6206_s4 + $0x68] sm:$0xff]  }
 0x236   :  { %4502 = vmatprep.mubr.msk.bf16.mxu1 %vm534_vm0, %v515_v22 }
 0x237   :  { %4503 = vmatmul.mubr.msk.bf16.vlgmr.msra.gmra.mrb[8].mxu1 %vm534_vm0, %v516_v23 }
 0x238   :  { %4507 = vmatpush3.bf16.msra.mxu1 %v5139_v6  ;;  %4510 = vmatprep.mubr.msk.bf16.mxu1 %vm534_vm0, %v447_v15 }
 0x239   :  { %4508 = vmatprep.subr.bf16.mxu1 %v5140_v24 }
 0x23c   :  { %4509 = vmatpush3.bf16.msra.mxu1 %v5140_v24 }
 0x23d   :  { %4534 = vmatprep.subr.bf16.mxu1 %v5141_v25 }
 0x23f   :  { %4511 = vmatmul.mubr.msk.bf16.vlgmr.msra.gmra.mrb[12].mxu1 %vm534_vm0, %v448_v26 }
 0x240   :  { %4535 = vmatpush3.bf16.msra.mxu1 %v5141_v25  ;;  %4538 = vmatprep.mubr.msk.bf16.mxu1 %vm534_vm0, %v717_v17  ;;  %v5151_v17 = vld [vmem:[%s6205_s3 + $0x3c] sm:$0xff]  }
 0x241   :  { %4536 = vmatprep.subr.bf16.mxu1 %v5142_v28 }
 0x244   :  { %4537 = vmatpush3.bf16.msra.mxu1 %v5142_v28 }
 0x245   :  { %4542 = vmatprep.subr.bf16.mxu1 %v5415_v47 }
 0x247   :  { %4539 = vmatmul.mubr.msk.bf16.vlgmr.msra.gmra.mrb[16].mxu1 %vm534_vm0, %v718_v30 }
 0x248   :  { %4543 = vmatpush3.bf16.msra.mxu1 %v5415_v47  ;;  %4558 = vmatprep.mubr.bf16.mxu1 %v5143_v29 }
 0x249   :  { %4544 = vmatprep.subr.bf16.mxu1 %v5423_v58 }
 0x24c   :  { %4545 = vmatpush3.bf16.msra.mxu1 %v5423_v58 }
 0x24d   :  { %4546 = vmatprep.subr.bf16.mxu1 %v5431_v5 }
 0x250   :  { %4547 = vmatpush3.bf16.msra.mxu1 %v5431_v5 }
 0x251   :  { %4548 = vmatprep.subr.bf16.mxu1 %v5439_v16 }
 0x254   :  { %4549 = vmatpush3.bf16.msra.mxu1 %v5439_v16 }
 0x255   :  { %4550 = vmatprep.subr.bf16.mxu1 %v5447_v27 }
 0x258   :  { %4551 = vmatpush3.bf16.msra.mxu1 %v5447_v27 }
 0x259   :  { %4552 = vmatprep.subr.bf16.mxu1 %v5455_v39 }
 0x25c   :  { %4553 = vmatpush3.bf16.msra.mxu1 %v5455_v39 }
 0x25d   :  { %4554 = vmatprep.subr.bf16.mxu1 %v5463_v51 }
 0x260   :  { %4555 = vmatpush3.bf16.msra.mxu1 %v5463_v51 }
 0x261   :  { %4556 = vmatprep.subr.bf16.mxu1 %v5471_v61 }
 0x264   :  { %4557 = vmatpush3.bf16.msra.mxu1 %v5471_v61 }
 0x265   :  { %4590 = vmatprep.subr.bf16.mxu1 %v5145_v31 }
 0x267   :  { %4559 = vmatmul.mubr.bf16.vlgmr.msra.gmra.mrb[20].mxu1 %v5144_v32 }
 0x268   :  { %4591 = vmatpush3.bf16.msra.mxu1 %v5145_v31 }
 0x269   :  { %4592 = vmatprep.subr.bf16.mxu1 %v5146_v33 }
 0x26c   :  { %4593 = vmatpush3.bf16.msra.mxu1 %v5146_v33 }
 0x26d   :  { %4598 = vmatprep.subr.bf16.mxu1 %v5415_v47 }
 0x30a   :  { %v4504_v34 = vpop.f32.mrb[8].mxu1 }
 0x30b   :  { %v575_v36 = vpop.f32.mrb[9].mxu1 }
 0x30c   :  { %v4505_v37 = vpop.f32.mrb[10].mxu1 }
 0x30d   :  { %v578_v38 = vpop.f32.mrb[11].mxu1 }
 0x312   :  { %v4512_v40 = vpop.f32.mrb[12].mxu1 }
 0x313   :  { %v650_v41 = vadd.f32 %v4512_v40, %v4504_v34  ;;  %v641_v42 = vpop.f32.mrb[13].mxu1  ;;  %v5156_v40 = vld [vmem:[%s6205_s3 + $0x50] ss:$0 sps:$4 sm:$0x11]  }
 0x314   :  { %v642_v43 = vadd.f32 %v641_v42, %v575_v36  ;;  %v4513_v44 = vpop.f32.mrb[14].mxu1  ;;  %v5155_v36 = vld [vmem:[%s6205_s3 + $0x48] sm:$0xff]  }
 0x315   :  { %v644_v45 = vpop.f32.mrb[15].mxu1 }
 0x316   :  { %v645_v46 = vadd.f32 %v644_v45, %v578_v38  ;;  %v5157_v38 = vld [vmem:[%s6206_s4 + $0x70] sm:$0xff]  }
 0x31a   :  { %v4540_v48 = vpop.f32.mrb[16].mxu1 }
 0x31b   :  { %v792_v49 = vadd.f32 %v4540_v48, %v650_v41  ;;  %v776_v50 = vpop.f32.mrb[17].mxu1  ;;  %v5158_v41 = vld [vmem:[%s6206_s4 + $0x78] sm:$0xff]  }
 0x31c   :  { %v790_v52 = vadd.f32 %v776_v50, %v642_v43  ;;  %v4541_v53 = vpop.f32.mrb[18].mxu1 }
 0x31d   :  { %v779_v54 = vpop.f32.mrb[19].mxu1 }
 0x31e   :  { %v791_v55 = vadd.f32 %v779_v54, %v645_v46 }
 0x33a   :  { %v4560_v56 = vpop.f32.mrb[20].mxu1 }
 0x33b   :  { %v841_v57 = vpop.f32.mrb[21].mxu1  ;;  %v856_v35 = vpack.c.bf16 %v4560_v56, %v4560_v56  ;;  %v5159_v56 = vld [vmem:[%s6205_s3 + $0x54] sm:$0xff]  }
 0x33c   :  { %v4561_v59 = vpop.f32.mrb[22].mxu1 }
 0x33d   :  { %v844_v60 = vpop.f32.mrb[23].mxu1  ;;  %v5161_v59 = vld [vmem:[%s6206_s4 + $0x80] sm:$0xff]  }
 0x33e   :  { %v855_v62 = vpack.c.bf16 %v844_v60, %v841_v57  ;;  %v5160_v60 = vld [vmem:[%s6205_s3 + $0x5c] ss:$0 sps:$4 sm:$0x11]  }
 0x340   :  { %4566 = vmatprep.mubr.msk.bf16.mxu0 %vm534_vm0, %v855_v62  ;;  %v5162_v62 = vld [vmem:[%s6206_s4 + $0x88] sm:$0xff]  }
 0x341   :  { %4567 = vmatmul.mubr.msk.bf16.vlgmr.msra.gmra.mrb[36].mxu0 %vm534_vm0, %v856_v35 }
 0x342   :  { %4571 = vmatpush3.bf16.msra.mxu0 %v5415_v47  ;;  %4586 = vmatprep.mubr.bf16.mxu0 %v5147_v63 }
 0x343   :  { %4572 = vmatprep.subr.bf16.mxu0 %v5423_v58 }
 0x346   :  { %4573 = vmatpush3.bf16.msra.mxu0 %v5423_v58 }
 0x347   :  { %4574 = vmatprep.subr.bf16.mxu0 %v5431_v5 }
 0x34a   :  { %4575 = vmatpush3.bf16.msra.mxu0 %v5431_v5 }
 0x34b   :  { %4576 = vmatprep.subr.bf16.mxu0 %v5439_v16 }
 0x34e   :  { %4577 = vmatpush3.bf16.msra.mxu0 %v5439_v16 }
 0x34f   :  { %4578 = vmatprep.subr.bf16.mxu0 %v5447_v27 }
 0x352   :  { %4579 = vmatpush3.bf16.msra.mxu0 %v5447_v27 }
 0x353   :  { %4580 = vmatprep.subr.bf16.mxu0 %v5455_v39 }
 0x356   :  { %4581 = vmatpush3.bf16.msra.mxu0 %v5455_v39 }
 0x357   :  { %4582 = vmatprep.subr.bf16.mxu0 %v5463_v51 }
 0x35a   :  { %4583 = vmatpush3.bf16.msra.mxu0 %v5463_v51 }
 0x35b   :  { %4584 = vmatprep.subr.bf16.mxu0 %v5471_v61 }
 0x35e   :  { %4585 = vmatpush3.bf16.msra.mxu0 %v5471_v61 }
 0x35f   :  { %4618 = vmatprep.subr.bf16.mxu0 %v5149_v0 }
 0x361   :  { %4587 = vmatmul.mubr.bf16.vlgmr.msra.gmra.mrb[40].mxu0 %v5148_v1 }
 0x362   :  { %4619 = vmatpush3.bf16.msra.mxu0 %v5149_v0 }
 0x363   :  { %4620 = vmatprep.subr.bf16.mxu0 %v5150_v2 }
 0x366   :  { %4621 = vmatpush3.bf16.msra.mxu0 %v5150_v2 }
 0x367   :  { %4626 = vmatprep.subr.bf16.mxu0 %v5415_v47 }
 0x414   :  { %v4568_v3 = vpop.f32.mrb[36].mxu0 }
 0x415   :  { %v930_v4 = vadd.f32 %v4568_v3, %v792_v49  ;;  %v914_v6 = vpop.f32.mrb[37].mxu0 }
 0x416   :  { %v928_v7 = vadd.f32 %v914_v6, %v790_v52  ;;  %v4569_v8 = vpop.f32.mrb[38].mxu0 }
 0x417   :  { %v917_v9 = vpop.f32.mrb[39].mxu0 }
 0x418   :  { %v929_v10 = vadd.f32 %v917_v9, %v791_v55 }
 0x434   :  { %v4588_v11 = vpop.f32.mrb[40].mxu0 }
 0x435   :  { %v979_v12 = vpop.f32.mrb[41].mxu0  ;;  %v994_v18 = vpack.c.bf16 %v4588_v11, %v4588_v11  ;;  %v5163_v11 = vld [vmem:[%s6205_s3 + $0x60] sm:$0xff]  }
 0x436   :  { %v4589_v13 = vpop.f32.mrb[42].mxu0 }
 0x437   :  { %v982_v14 = vpop.f32.mrb[43].mxu0  ;;  %v5165_v13 = vld [vmem:[%s6206_s4 + $0x90] sm:$0xff]  }
 0x438   :  { %v993_v15 = vpack.c.bf16 %v982_v14, %v979_v12  ;;  %v5164_v14 = vld [vmem:[%s6205_s3 + $0x68] ss:$0 sps:$4 sm:$0x11]  }
 0x43a   :  { %4594 = vmatprep.mubr.msk.bf16.mxu1 %vm534_vm0, %v993_v15  ;;  %v5166_v15 = vld [vmem:[%s6206_s4 + $0x98] sm:$0xff]  }
 0x43b   :  { %4595 = vmatmul.mubr.msk.bf16.vlgmr.msra.gmra.mrb[24].mxu1 %vm534_vm0, %v994_v18 }
 0x43c   :  { %4599 = vmatpush3.bf16.msra.mxu1 %v5415_v47  ;;  %4614 = vmatprep.mubr.bf16.mxu1 %v5151_v17 }
 0x43d   :  { %4600 = vmatprep.subr.bf16.mxu1 %v5423_v58 }
 0x440   :  { %4601 = vmatpush3.bf16.msra.mxu1 %v5423_v58 }
 0x441   :  { %4602 = vmatprep.subr.bf16.mxu1 %v5431_v5 }
 0x444   :  { %4603 = vmatpush3.bf16.msra.mxu1 %v5431_v5 }
 0x445   :  { %4604 = vmatprep.subr.bf16.mxu1 %v5439_v16 }
 0x448   :  { %4605 = vmatpush3.bf16.msra.mxu1 %v5439_v16 }
 0x449   :  { %4606 = vmatprep.subr.bf16.mxu1 %v5447_v27 }
 0x44c   :  { %4607 = vmatpush3.bf16.msra.mxu1 %v5447_v27 }
 0x44d   :  { %4608 = vmatprep.subr.bf16.mxu1 %v5455_v39 }
 0x450   :  { %4609 = vmatpush3.bf16.msra.mxu1 %v5455_v39 }
 0x451   :  { %4610 = vmatprep.subr.bf16.mxu1 %v5463_v51 }
 0x454   :  { %4611 = vmatpush3.bf16.msra.mxu1 %v5463_v51 }
 0x455   :  { %4612 = vmatprep.subr.bf16.mxu1 %v5471_v61 }
 0x458   :  { %4613 = vmatpush3.bf16.msra.mxu1 %v5471_v61 }
 0x459   :  { %4646 = vmatprep.subr.bf16.mxu1 %v5153_v19 }
 0x45b   :  { %4615 = vmatmul.mubr.bf16.vlgmr.msra.gmra.mrb[28].mxu1 %v5152_v20 }
 0x45c   :  { %4647 = vmatpush3.bf16.msra.mxu1 %v5153_v19 }
 0x45d   :  { %4648 = vmatprep.subr.bf16.mxu1 %v5154_v21 }
 0x460   :  { %4649 = vmatpush3.bf16.msra.mxu1 %v5154_v21 }
 0x461   :  { %4654 = vmatprep.subr.bf16.mxu1 %v5415_v47 }
 0x50e   :  { %v4596_v22 = vpop.f32.mrb[24].mxu1 }
 0x50f   :  { %v1068_v23 = vadd.f32 %v4596_v22, %v930_v4  ;;  %v1052_v24 = vpop.f32.mrb[25].mxu1 }
 0x510   :  { %v1066_v25 = vadd.f32 %v1052_v24, %v928_v7  ;;  %v4597_v26 = vpop.f32.mrb[26].mxu1 }
 0x511   :  { %v1055_v28 = vpop.f32.mrb[27].mxu1 }
 0x512   :  { %v1067_v29 = vadd.f32 %v1055_v28, %v929_v10 }
 0x52e   :  { %v4616_v30 = vpop.f32.mrb[28].mxu1 }
 0x52f   :  { %v1117_v31 = vpop.f32.mrb[29].mxu1  ;;  %v1132_v37 = vpack.c.bf16 %v4616_v30, %v4616_v30  ;;  %v5167_v30 = vld [vmem:[%s6205_s3 + $0x6c] sm:$0xff]  }
 0x530   :  { %v4617_v32 = vpop.f32.mrb[30].mxu1 }
 0x531   :  { %v1120_v33 = vpop.f32.mrb[31].mxu1  ;;  %v5169_v32 = vld [vmem:[%s6206_s4 + $0xa0] sm:$0xff]  }
 0x532   :  { %v1131_v34 = vpack.c.bf16 %v1120_v33, %v1117_v31  ;;  %v5168_v33 = vld [vmem:[%s6205_s3 + $0x74] ss:$0 sps:$4 sm:$0x11]  }
 0x534   :  { %4622 = vmatprep.mubr.msk.bf16.mxu0 %vm534_vm0, %v1131_v34  ;;  %v5170_v34 = vld [vmem:[%s6206_s4 + $0xa8] sm:$0xff]  }
 0x535   :  { %4623 = vmatmul.mubr.msk.bf16.vlgmr.msra.gmra.mrb[44].mxu0 %vm534_vm0, %v1132_v37 }
 0x536   :  { %4627 = vmatpush3.bf16.msra.mxu0 %v5415_v47  ;;  %4642 = vmatprep.mubr.bf16.mxu0 %v5155_v36 }
 0x537   :  { %4628 = vmatprep.subr.bf16.mxu0 %v5423_v58 }
 0x53a   :  { %4629 = vmatpush3.bf16.msra.mxu0 %v5423_v58 }
 0x53b   :  { %4630 = vmatprep.subr.bf16.mxu0 %v5431_v5 }
 0x53e   :  { %4631 = vmatpush3.bf16.msra.mxu0 %v5431_v5 }
 0x53f   :  { %4632 = vmatprep.subr.bf16.mxu0 %v5439_v16 }
 0x542   :  { %4633 = vmatpush3.bf16.msra.mxu0 %v5439_v16 }
 0x543   :  { %4634 = vmatprep.subr.bf16.mxu0 %v5447_v27 }
 0x546   :  { %4635 = vmatpush3.bf16.msra.mxu0 %v5447_v27 }
 0x547   :  { %4636 = vmatprep.subr.bf16.mxu0 %v5455_v39 }
 0x54a   :  { %4637 = vmatpush3.bf16.msra.mxu0 %v5455_v39 }
 0x54b   :  { %4638 = vmatprep.subr.bf16.mxu0 %v5463_v51 }
 0x54e   :  { %4639 = vmatpush3.bf16.msra.mxu0 %v5463_v51 }
 0x54f   :  { %4640 = vmatprep.subr.bf16.mxu0 %v5471_v61 }
 0x552   :  { %4641 = vmatpush3.bf16.msra.mxu0 %v5471_v61 }
 0x553   :  { %4674 = vmatprep.subr.bf16.mxu0 %v5157_v38 }
 0x555   :  { %4643 = vmatmul.mubr.bf16.vlgmr.msra.gmra.mrb[48].mxu0 %v5156_v40 }
 0x556   :  { %4675 = vmatpush3.bf16.msra.mxu0 %v5157_v38 }
 0x557   :  { %4676 = vmatprep.subr.bf16.mxu0 %v5158_v41 }
 0x55a   :  { %4677 = vmatpush3.bf16.msra.mxu0 %v5158_v41 }
 0x55b   :  { %4682 = vmatprep.subr.bf16.mxu0 %v5415_v47 }
 0x608   :  { %v4624_v42 = vpop.f32.mrb[44].mxu0 }
 0x609   :  { %v1206_v43 = vadd.f32 %v4624_v42, %v1068_v23  ;;  %v1190_v44 = vpop.f32.mrb[45].mxu0 }
 0x60a   :  { %v1204_v45 = vadd.f32 %v1190_v44, %v1066_v25  ;;  %v4625_v46 = vpop.f32.mrb[46].mxu0 }
 0x60b   :  { %v1193_v48 = vpop.f32.mrb[47].mxu0 }
 0x60c   :  { %v1205_v49 = vadd.f32 %v1193_v48, %v1067_v29 }
 0x628   :  { %v4644_v50 = vpop.f32.mrb[48].mxu0 }
 0x629   :  { %v1255_v52 = vpop.f32.mrb[49].mxu0  ;;  %v1270_v57 = vpack.c.bf16 %v4644_v50, %v4644_v50  ;;  %v5171_v50 = vld [vmem:[%s6205_s3 + $0x78] sm:$0xff]  }
 0x62a   :  { %v4645_v53 = vpop.f32.mrb[50].mxu0 }
 0x62b   :  { %v1258_v54 = vpop.f32.mrb[51].mxu0  ;;  %v5173_v53 = vld [vmem:[%s6206_s4 + $0xb0] sm:$0xff]  }
 0x62c   :  { %v1269_v55 = vpack.c.bf16 %v1258_v54, %v1255_v52  ;;  %v5172_v54 = vld [vmem:[%s6205_s3 + $0x80] ss:$0 sps:$4 sm:$0x11]  }
 0x62e   :  { %4650 = vmatprep.mubr.msk.bf16.mxu1 %vm534_vm0, %v1269_v55  ;;  %v5174_v55 = vld [vmem:[%s6206_s4 + $0xb8] sm:$0xff]  }
 0x62f   :  { %4651 = vmatmul.mubr.msk.bf16.vlgmr.msra.gmra.mrb[32].mxu1 %vm534_vm0, %v1270_v57 }
 0x630   :  { %4655 = vmatpush3.bf16.msra.mxu1 %v5415_v47  ;;  %4670 = vmatprep.mubr.bf16.mxu1 %v5159_v56 }
 0x631   :  { %4656 = vmatprep.subr.bf16.mxu1 %v5423_v58 }
 0x634   :  { %4657 = vmatpush3.bf16.msra.mxu1 %v5423_v58 }
 0x635   :  { %4658 = vmatprep.subr.bf16.mxu1 %v5431_v5 }
 0x638   :  { %4659 = vmatpush3.bf16.msra.mxu1 %v5431_v5 }
 0x639   :  { %4660 = vmatprep.subr.bf16.mxu1 %v5439_v16 }
 0x63c   :  { %4661 = vmatpush3.bf16.msra.mxu1 %v5439_v16 }
 0x63d   :  { %4662 = vmatprep.subr.bf16.mxu1 %v5447_v27 }
 0x640   :  { %4663 = vmatpush3.bf16.msra.mxu1 %v5447_v27 }
 0x641   :  { %4664 = vmatprep.subr.bf16.mxu1 %v5455_v39 }
 0x644   :  { %4665 = vmatpush3.bf16.msra.mxu1 %v5455_v39 }
 0x645   :  { %4666 = vmatprep.subr.bf16.mxu1 %v5463_v51 }
 0x648   :  { %4667 = vmatpush3.bf16.msra.mxu1 %v5463_v51 }
 0x649   :  { %4668 = vmatprep.subr.bf16.mxu1 %v5471_v61 }
 0x64c   :  { %4669 = vmatpush3.bf16.msra.mxu1 %v5471_v61 }
 0x64d   :  { %4702 = vmatprep.subr.bf16.mxu1 %v5161_v59 }
 0x64f   :  { %4671 = vmatmul.mubr.bf16.vlgmr.msra.gmra.mrb[36].mxu1 %v5160_v60 }
 0x650   :  { %4703 = vmatpush3.bf16.msra.mxu1 %v5161_v59 }
 0x651   :  { %4704 = vmatprep.subr.bf16.mxu1 %v5162_v62 }
 0x654   :  { %4705 = vmatpush3.bf16.msra.mxu1 %v5162_v62 }
 0x655   :  { %4710 = vmatprep.subr.bf16.mxu1 %v5415_v47 }
 0x702   :  { %v4652_v63 = vpop.f32.mrb[32].mxu1 }
 0x703   :  { %v1344_v35 = vadd.f32 %v4652_v63, %v1206_v43  ;;  %v1328_v0 = vpop.f32.mrb[33].mxu1 }
 0x704   :  { %v1342_v1 = vadd.f32 %v1328_v0, %v1204_v45  ;;  %v4653_v2 = vpop.f32.mrb[34].mxu1 }
 0x705   :  { %v1331_v3 = vpop.f32.mrb[35].mxu1 }
 0x706   :  { %v1343_v4 = vadd.f32 %v1331_v3, %v1205_v49 }
 0x722   :  { %v4672_v6 = vpop.f32.mrb[36].mxu1 }
 0x723   :  { %v1393_v7 = vpop.f32.mrb[37].mxu1  ;;  %v1408_v12 = vpack.c.bf16 %v4672_v6, %v4672_v6  ;;  %v5175_v6 = vld [vmem:[%s6205_s3 + $0x84] sm:$0xff]  }
 0x724   :  { %v4673_v8 = vpop.f32.mrb[38].mxu1 }
 0x725   :  { %v1396_v9 = vpop.f32.mrb[39].mxu1  ;;  %v5177_v8 = vld [vmem:[%s6206_s4 + $0xc0] sm:$0xff]  }
 0x726   :  { %v1407_v10 = vpack.c.bf16 %v1396_v9, %v1393_v7  ;;  %v5176_v9 = vld [vmem:[%s6205_s3 + $0x8c] ss:$0 sps:$4 sm:$0x11]  }
 0x728   :  { %4678 = vmatprep.mubr.msk.bf16.mxu0 %vm534_vm0, %v1407_v10  ;;  %v5178_v10 = vld [vmem:[%s6206_s4 + $0xc8] sm:$0xff]  }
 0x729   :  { %4679 = vmatmul.mubr.msk.bf16.vlgmr.msra.gmra.mrb[52].mxu0 %vm534_vm0, %v1408_v12 }
 0x72a   :  { %4683 = vmatpush3.bf16.msra.mxu0 %v5415_v47  ;;  %4698 = vmatprep.mubr.bf16.mxu0 %v5163_v11 }
 0x72b   :  { %4684 = vmatprep.subr.bf16.mxu0 %v5423_v58 }
 0x72e   :  { %4685 = vmatpush3.bf16.msra.mxu0 %v5423_v58 }
 0x72f   :  { %4686 = vmatprep.subr.bf16.mxu0 %v5431_v5 }
 0x732   :  { %4687 = vmatpush3.bf16.msra.mxu0 %v5431_v5 }
 0x733   :  { %4688 = vmatprep.subr.bf16.mxu0 %v5439_v16 }
 0x736   :  { %4689 = vmatpush3.bf16.msra.mxu0 %v5439_v16 }
 0x737   :  { %4690 = vmatprep.subr.bf16.mxu0 %v5447_v27 }
 0x73a   :  { %4691 = vmatpush3.bf16.msra.mxu0 %v5447_v27 }
 0x73b   :  { %4692 = vmatprep.subr.bf16.mxu0 %v5455_v39 }
 0x73e   :  { %4693 = vmatpush3.bf16.msra.mxu0 %v5455_v39 }
 0x73f   :  { %4694 = vmatprep.subr.bf16.mxu0 %v5463_v51 }
 0x742   :  { %4695 = vmatpush3.bf16.msra.mxu0 %v5463_v51 }
 0x743   :  { %4696 = vmatprep.subr.bf16.mxu0 %v5471_v61 }
 0x746   :  { %4697 = vmatpush3.bf16.msra.mxu0 %v5471_v61 }
 0x747   :  { %4730 = vmatprep.subr.bf16.mxu0 %v5165_v13 }
 0x749   :  { %4699 = vmatmul.mubr.bf16.vlgmr.msra.gmra.mrb[56].mxu0 %v5164_v14 }
 0x74a   :  { %4731 = vmatpush3.bf16.msra.mxu0 %v5165_v13 }
 0x74b   :  { %4732 = vmatprep.subr.bf16.mxu0 %v5166_v15 }
 0x74e   :  { %4733 = vmatpush3.bf16.msra.mxu0 %v5166_v15 }
 0x74f   :  { %4738 = vmatprep.subr.bf16.mxu0 %v5415_v47 }
 0x7fc   :  { %v4680_v17 = vpop.f32.mrb[52].mxu0 }
 0x7fd   :  { %v1482_v18 = vadd.f32 %v4680_v17, %v1344_v35  ;;  %v1466_v19 = vpop.f32.mrb[53].mxu0 }
 0x7fe   :  { %v1480_v20 = vadd.f32 %v1466_v19, %v1342_v1  ;;  %v4681_v21 = vpop.f32.mrb[54].mxu0 }
 0x7ff   :  { %v1469_v22 = vpop.f32.mrb[55].mxu0 }
 0x800   :  { %v1481_v23 = vadd.f32 %v1469_v22, %v1343_v4 }
 0x81c   :  { %v4700_v24 = vpop.f32.mrb[56].mxu0 }
 0x81d   :  { %v1531_v25 = vpop.f32.mrb[57].mxu0  ;;  %v1546_v31 = vpack.c.bf16 %v4700_v24, %v4700_v24  ;;  %v5179_v24 = vld [vmem:[%s6205_s3 + $0x90] sm:$0xff]  }
 0x81e   :  { %v4701_v26 = vpop.f32.mrb[58].mxu0 }
 0x81f   :  { %v1534_v28 = vpop.f32.mrb[59].mxu0  ;;  %v5181_v26 = vld [vmem:[%s6206_s4 + $0xd0] sm:$0xff]  }
 0x820   :  { %v1545_v29 = vpack.c.bf16 %v1534_v28, %v1531_v25  ;;  %v5180_v28 = vld [vmem:[%s6205_s3 + $0x98] ss:$0 sps:$4 sm:$0x11]  }
 0x822   :  { %4706 = vmatprep.mubr.msk.bf16.mxu1 %vm534_vm0, %v1545_v29  ;;  %v5182_v29 = vld [vmem:[%s6206_s4 + $0xd8] sm:$0xff]  }
 0x823   :  { %4707 = vmatmul.mubr.msk.bf16.vlgmr.msra.gmra.mrb[40].mxu1 %vm534_vm0, %v1546_v31 }
 0x824   :  { %4711 = vmatpush3.bf16.msra.mxu1 %v5415_v47  ;;  %4726 = vmatprep.mubr.bf16.mxu1 %v5167_v30 }
 0x825   :  { %4712 = vmatprep.subr.bf16.mxu1 %v5423_v58 }
 0x828   :  { %4713 = vmatpush3.bf16.msra.mxu1 %v5423_v58 }
 0x829   :  { %4714 = vmatprep.subr.bf16.mxu1 %v5431_v5 }
 0x82c   :  { %4715 = vmatpush3.bf16.msra.mxu1 %v5431_v5 }
 0x82d   :  { %4716 = vmatprep.subr.bf16.mxu1 %v5439_v16 }
 0x830   :  { %4717 = vmatpush3.bf16.msra.mxu1 %v5439_v16 }
 0x831   :  { %4718 = vmatprep.subr.bf16.mxu1 %v5447_v27 }
 0x834   :  { %4719 = vmatpush3.bf16.msra.mxu1 %v5447_v27 }
 0x835   :  { %4720 = vmatprep.subr.bf16.mxu1 %v5455_v39 }
 0x838   :  { %4721 = vmatpush3.bf16.msra.mxu1 %v5455_v39 }
 0x839   :  { %4722 = vmatprep.subr.bf16.mxu1 %v5463_v51 }
 0x83c   :  { %4723 = vmatpush3.bf16.msra.mxu1 %v5463_v51 }
 0x83d   :  { %4724 = vmatprep.subr.bf16.mxu1 %v5471_v61 }
 0x840   :  { %4725 = vmatpush3.bf16.msra.mxu1 %v5471_v61 }
 0x841   :  { %4758 = vmatprep.subr.bf16.mxu1 %v5169_v32 }
 0x843   :  { %4727 = vmatmul.mubr.bf16.vlgmr.msra.gmra.mrb[44].mxu1 %v5168_v33 }
 0x844   :  { %4759 = vmatpush3.bf16.msra.mxu1 %v5169_v32 }
 0x845   :  { %4760 = vmatprep.subr.bf16.mxu1 %v5170_v34 }
 0x848   :  { %4761 = vmatpush3.bf16.msra.mxu1 %v5170_v34 }
 0x849   :  { %4766 = vmatprep.subr.bf16.mxu1 %v5415_v47 }
 0x8f6   :  { %v4708_v36 = vpop.f32.mrb[40].mxu1 }
 0x8f7   :  { %v1620_v37 = vadd.f32 %v4708_v36, %v1482_v18  ;;  %v1604_v38 = vpop.f32.mrb[41].mxu1 }
 0x8f8   :  { %v1618_v40 = vadd.f32 %v1604_v38, %v1480_v20  ;;  %v4709_v41 = vpop.f32.mrb[42].mxu1 }
 0x8f9   :  { %v1607_v42 = vpop.f32.mrb[43].mxu1 }
 0x8fa   :  { %v1619_v43 = vadd.f32 %v1607_v42, %v1481_v23 }
 0x916   :  { %v4728_v44 = vpop.f32.mrb[44].mxu1 }
 0x917   :  { %v1669_v45 = vpop.f32.mrb[45].mxu1  ;;  %v1684_v52 = vpack.c.bf16 %v4728_v44, %v4728_v44  ;;  %v5183_v44 = vld [vmem:[%s6205_s3 + $0x9c] sm:$0xff]  }
 0x918   :  { %v4729_v46 = vpop.f32.mrb[46].mxu1 }
 0x919   :  { %v1672_v48 = vpop.f32.mrb[47].mxu1  ;;  %v5185_v46 = vld [vmem:[%s6206_s4 + $0xe0] sm:$0xff]  }
 0x91a   :  { %v1683_v49 = vpack.c.bf16 %v1672_v48, %v1669_v45  ;;  %v5184_v48 = vld [vmem:[%s6205_s3 + $0xa4] ss:$0 sps:$4 sm:$0x11]  }
 0x91c   :  { %4734 = vmatprep.mubr.msk.bf16.mxu0 %vm534_vm0, %v1683_v49  ;;  %v5186_v49 = vld [vmem:[%s6206_s4 + $0xe8] sm:$0xff]  }
 0x91d   :  { %4735 = vmatmul.mubr.msk.bf16.vlgmr.msra.gmra.mrb[60].mxu0 %vm534_vm0, %v1684_v52 }
 0x91e   :  { %4739 = vmatpush3.bf16.msra.mxu0 %v5415_v47  ;;  %4754 = vmatprep.mubr.bf16.mxu0 %v5171_v50 }
 0x91f   :  { %4740 = vmatprep.subr.bf16.mxu0 %v5423_v58 }
 0x922   :  { %4741 = vmatpush3.bf16.msra.mxu0 %v5423_v58 }
 0x923   :  { %4742 = vmatprep.subr.bf16.mxu0 %v5431_v5 }
 0x926   :  { %4743 = vmatpush3.bf16.msra.mxu0 %v5431_v5 }
 0x927   :  { %4744 = vmatprep.subr.bf16.mxu0 %v5439_v16 }
 0x92a   :  { %4745 = vmatpush3.bf16.msra.mxu0 %v5439_v16 }
 0x92b   :  { %4746 = vmatprep.subr.bf16.mxu0 %v5447_v27 }
 0x92e   :  { %4747 = vmatpush3.bf16.msra.mxu0 %v5447_v27 }
 0x92f   :  { %4748 = vmatprep.subr.bf16.mxu0 %v5455_v39 }
 0x932   :  { %4749 = vmatpush3.bf16.msra.mxu0 %v5455_v39 }
 0x933   :  { %4750 = vmatprep.subr.bf16.mxu0 %v5463_v51 }
 0x936   :  { %4751 = vmatpush3.bf16.msra.mxu0 %v5463_v51 }
 0x937   :  { %4752 = vmatprep.subr.bf16.mxu0 %v5471_v61 }
 0x93a   :  { %4753 = vmatpush3.bf16.msra.mxu0 %v5471_v61 }
 0x93b   :  { %4786 = vmatprep.subr.bf16.mxu0 %v5173_v53 }
 0x93d   :  { %4755 = vmatmul.mubr.bf16.vlgmr.msra.gmra.mrb[64].mxu0 %v5172_v54 }
 0x93e   :  { %4787 = vmatpush3.bf16.msra.mxu0 %v5173_v53 }
 0x93f   :  { %4788 = vmatprep.subr.bf16.mxu0 %v5174_v55 }
 0x942   :  { %4789 = vmatpush3.bf16.msra.mxu0 %v5174_v55 }
 0x943   :  { %4794 = vmatprep.subr.bf16.mxu0 %v5415_v47 }
 0x9f0   :  { %v4736_v56 = vpop.f32.mrb[60].mxu0 }
 0x9f1   :  { %v1758_v57 = vadd.f32 %v4736_v56, %v1620_v37  ;;  %v1742_v59 = vpop.f32.mrb[61].mxu0 }
 0x9f2   :  { %v1756_v60 = vadd.f32 %v1742_v59, %v1618_v40  ;;  %v4737_v62 = vpop.f32.mrb[62].mxu0 }
 0x9f3   :  { %v1745_v63 = vpop.f32.mrb[63].mxu0 }
 0x9f4   :  { %v1757_v35 = vadd.f32 %v1745_v63, %v1619_v43 }
 0xa10   :  { %v4756_v0 = vpop.f32.mrb[64].mxu0 }
 0xa11   :  { %v1807_v1 = vpop.f32.mrb[65].mxu0  ;;  %v1822_v7 = vpack.c.bf16 %v4756_v0, %v4756_v0  ;;  %v5187_v0 = vld [vmem:[%s6205_s3 + $0xa8] sm:$0xff]  }
 0xa12   :  { %v4757_v2 = vpop.f32.mrb[66].mxu0 }
 0xa13   :  { %v1810_v3 = vpop.f32.mrb[67].mxu0  ;;  %v5188_v2 = vld [vmem:[%s6205_s3 + $0xb0] ss:$0 sps:$4 sm:$0x11]  }
 0xa14   :  { %v1821_v4 = vpack.c.bf16 %v1810_v3, %v1807_v1 }
 0xa16   :  { %4762 = vmatprep.mubr.msk.bf16.mxu1 %vm534_vm0, %v1821_v4 }
 0xa17   :  { %4763 = vmatmul.mubr.msk.bf16.vlgmr.msra.gmra.mrb[48].mxu1 %vm534_vm0, %v1822_v7 }
 0xa18   :  { %4767 = vmatpush3.bf16.msra.mxu1 %v5415_v47  ;;  %4782 = vmatprep.mubr.bf16.mxu1 %v5175_v6 }
 0xa19   :  { %4768 = vmatprep.subr.bf16.mxu1 %v5423_v58 }
 0xa1c   :  { %4769 = vmatpush3.bf16.msra.mxu1 %v5423_v58 }
 0xa1d   :  { %4770 = vmatprep.subr.bf16.mxu1 %v5431_v5 }
 0xa20   :  { %4771 = vmatpush3.bf16.msra.mxu1 %v5431_v5 }
 0xa21   :  { %4772 = vmatprep.subr.bf16.mxu1 %v5439_v16 }
 0xa24   :  { %4773 = vmatpush3.bf16.msra.mxu1 %v5439_v16 }
 0xa25   :  { %4774 = vmatprep.subr.bf16.mxu1 %v5447_v27 }
 0xa28   :  { %4775 = vmatpush3.bf16.msra.mxu1 %v5447_v27 }
 0xa29   :  { %4776 = vmatprep.subr.bf16.mxu1 %v5455_v39 }
 0xa2c   :  { %4777 = vmatpush3.bf16.msra.mxu1 %v5455_v39 }
 0xa2d   :  { %4778 = vmatprep.subr.bf16.mxu1 %v5463_v51 }
 0xa30   :  { %4779 = vmatpush3.bf16.msra.mxu1 %v5463_v51 }
 0xa31   :  { %4780 = vmatprep.subr.bf16.mxu1 %v5471_v61 }
 0xa34   :  { %4781 = vmatpush3.bf16.msra.mxu1 %v5471_v61 }
 0xa35   :  { %4814 = vmatprep.subr.bf16.mxu1 %v5177_v8 }
 0xa37   :  { %4783 = vmatmul.mubr.bf16.vlgmr.msra.gmra.mrb[52].mxu1 %v5176_v9 }
 0xa38   :  { %4815 = vmatpush3.bf16.msra.mxu1 %v5177_v8 }
 0xa39   :  { %4816 = vmatprep.subr.bf16.mxu1 %v5178_v10 }
 0xa3c   :  { %4817 = vmatpush3.bf16.msra.mxu1 %v5178_v10 }
 0xa3d   :  { %4822 = vmatprep.subr.bf16.mxu1 %v5415_v47 }
 0xaea   :  { %v4764_v11 = vpop.f32.mrb[48].mxu1 }
 0xaeb   :  { %v1896_v12 = vadd.f32 %v4764_v11, %v1758_v57  ;;  %v1880_v13 = vpop.f32.mrb[49].mxu1 }
 0xaec   :  { %v1894_v14 = vadd.f32 %v1880_v13, %v1756_v60  ;;  %v4765_v15 = vpop.f32.mrb[50].mxu1 }
 0xaed   :  { %v1883_v17 = vpop.f32.mrb[51].mxu1 }
 0xaee   :  { %v1895_v18 = vadd.f32 %v1883_v17, %v1757_v35  ;;  %v5189_v17 = vld [vmem:[%s6205_s3 + $0xb4] sm:$0xff]  }
 0xb0a   :  { %v4784_v19 = vpop.f32.mrb[52].mxu1 }
 0xb0b   :  { %v1945_v20 = vpop.f32.mrb[53].mxu1  ;;  %v1960_v25 = vpack.c.bf16 %v4784_v19, %v4784_v19 }
 0xb0c   :  { %v4785_v21 = vpop.f32.mrb[54].mxu1 }
 0xb0d   :  { %v1948_v22 = vpop.f32.mrb[55].mxu1 }
 0xb0e   :  { %v1959_v23 = vpack.c.bf16 %v1948_v22, %v1945_v20 }
 0xb10   :  { %4790 = vmatprep.mubr.msk.bf16.mxu0 %vm534_vm0, %v1959_v23 }
 0xb11   :  { %4791 = vmatmul.mubr.msk.bf16.vlgmr.msra.gmra.mrb[68].mxu0 %vm534_vm0, %v1960_v25 }
 0xb12   :  { %4795 = vmatpush3.bf16.msra.mxu0 %v5415_v47  ;;  %4810 = vmatprep.mubr.bf16.mxu0 %v5179_v24 }
 0xb13   :  { %4796 = vmatprep.subr.bf16.mxu0 %v5423_v58 }
 0xb16   :  { %4797 = vmatpush3.bf16.msra.mxu0 %v5423_v58 }
 0xb17   :  { %4798 = vmatprep.subr.bf16.mxu0 %v5431_v5 }
 0xb1a   :  { %4799 = vmatpush3.bf16.msra.mxu0 %v5431_v5 }
 0xb1b   :  { %4800 = vmatprep.subr.bf16.mxu0 %v5439_v16 }
 0xb1e   :  { %4801 = vmatpush3.bf16.msra.mxu0 %v5439_v16 }
 0xb1f   :  { %4802 = vmatprep.subr.bf16.mxu0 %v5447_v27 }
 0xb22   :  { %4803 = vmatpush3.bf16.msra.mxu0 %v5447_v27 }
 0xb23   :  { %4804 = vmatprep.subr.bf16.mxu0 %v5455_v39 }
 0xb26   :  { %4805 = vmatpush3.bf16.msra.mxu0 %v5455_v39 }
 0xb27   :  { %4806 = vmatprep.subr.bf16.mxu0 %v5463_v51 }
 0xb2a   :  { %4807 = vmatpush3.bf16.msra.mxu0 %v5463_v51 }
 0xb2b   :  { %4808 = vmatprep.subr.bf16.mxu0 %v5471_v61 }
 0xb2e   :  { %4809 = vmatpush3.bf16.msra.mxu0 %v5471_v61 }
 0xb2f   :  { %4842 = vmatprep.subr.bf16.mxu0 %v5181_v26 }
 0xb31   :  { %4811 = vmatmul.mubr.bf16.vlgmr.msra.gmra.mrb[72].mxu0 %v5180_v28  ;;  %v5253_v28 = vmov 0.0  }
 0xb32   :  { %4843 = vmatpush3.bf16.msra.mxu0 %v5181_v26 }
 0xb33   :  { %4844 = vmatprep.subr.bf16.mxu0 %v5182_v29 }
 0xb36   :  { %4845 = vmatpush3.bf16.msra.mxu0 %v5182_v29  ;;  %v5193_v29 = vld [vmem:[%s6209_s7] sm:$0xff]  }
 0xb37   :  { %4850 = vmatprep.subr.bf16.mxu0 %v5415_v47 }
 0xbe4   :  { %v4792_v30 = vpop.f32.mrb[68].mxu0 }
 0xbe5   :  { %v2034_v31 = vadd.f32 %v4792_v30, %v1896_v12  ;;  %v2018_v32 = vpop.f32.mrb[69].mxu0  ;;  %v5194_v30 = vld [vmem:[%s6209_s7 + $0x8] sm:$0xff]  }
 0xbe6   :  { %v2032_v33 = vadd.f32 %v2018_v32, %v1894_v14  ;;  %v4793_v34 = vpop.f32.mrb[70].mxu0 }
 0xbe7   :  { %v2021_v36 = vpop.f32.mrb[71].mxu0 }
 0xbe8   :  { %v2033_v37 = vadd.f32 %v2021_v36, %v1895_v18 }
 0xc04   :  { %v4812_v38 = vpop.f32.mrb[72].mxu0 }
 0xc05   :  { %v2083_v40 = vpop.f32.mrb[73].mxu0  ;;  %v2098_v45 = vpack.c.bf16 %v4812_v38, %v4812_v38 }
 0xc06   :  { %v4813_v41 = vpop.f32.mrb[74].mxu0 }
 0xc07   :  { %v2086_v42 = vpop.f32.mrb[75].mxu0 }
 0xc08   :  { %v2097_v43 = vpack.c.bf16 %v2086_v42, %v2083_v40 }
 0xc0a   :  { %4818 = vmatprep.mubr.msk.bf16.mxu1 %vm534_vm0, %v2097_v43 }
 0xc0b   :  { %4819 = vmatmul.mubr.msk.bf16.vlgmr.msra.gmra.mrb[56].mxu1 %vm534_vm0, %v2098_v45 }
 0xc0c   :  { %4823 = vmatpush3.bf16.msra.mxu1 %v5415_v47  ;;  %4838 = vmatprep.mubr.bf16.mxu1 %v5183_v44 }
 0xc0d   :  { %4824 = vmatprep.subr.bf16.mxu1 %v5423_v58 }
 0xc10   :  { %4825 = vmatpush3.bf16.msra.mxu1 %v5423_v58 }
 0xc11   :  { %4826 = vmatprep.subr.bf16.mxu1 %v5431_v5 }
 0xc14   :  { %4827 = vmatpush3.bf16.msra.mxu1 %v5431_v5 }
 0xc15   :  { %4828 = vmatprep.subr.bf16.mxu1 %v5439_v16 }
 0xc18   :  { %4829 = vmatpush3.bf16.msra.mxu1 %v5439_v16 }
 0xc19   :  { %4830 = vmatprep.subr.bf16.mxu1 %v5447_v27 }
 0xc1c   :  { %4831 = vmatpush3.bf16.msra.mxu1 %v5447_v27 }
 0xc1d   :  { %4832 = vmatprep.subr.bf16.mxu1 %v5455_v39 }
 0xc20   :  { %4833 = vmatpush3.bf16.msra.mxu1 %v5455_v39 }
 0xc21   :  { %4834 = vmatprep.subr.bf16.mxu1 %v5463_v51 }
 0xc24   :  { %4835 = vmatpush3.bf16.msra.mxu1 %v5463_v51 }
 0xc25   :  { %4836 = vmatprep.subr.bf16.mxu1 %v5471_v61 }
 0xc28   :  { %4837 = vmatpush3.bf16.msra.mxu1 %v5471_v61 }
 0xc29   :  { %4870 = vmatprep.subr.bf16.mxu1 %v5185_v46 }
 0xc2b   :  { %4839 = vmatmul.mubr.bf16.vlgmr.msra.gmra.mrb[60].mxu1 %v5184_v48 }
 0xc2c   :  { %4871 = vmatpush3.bf16.msra.mxu1 %v5185_v46 }
 0xc2d   :  { %4872 = vmatprep.subr.bf16.mxu1 %v5186_v49 }
 0xc30   :  { %4873 = vmatpush3.bf16.msra.mxu1 %v5186_v49 }
 0xc31   :  { %4878 = vmatprep.subr.bf16.mxu1 %v5415_v47 }
 0xcde   :  { %v4820_v50 = vpop.f32.mrb[56].mxu1 }
 0xcdf   :  { %v2172_v52 = vadd.f32 %v4820_v50, %v2034_v31  ;;  %v2156_v53 = vpop.f32.mrb[57].mxu1  ;;  %v5196_v31 = vld [vmem:[%s6209_s7 + $0x10] sm:$0xff]  }
 0xce0   :  { %v2170_v54 = vadd.f32 %v2156_v53, %v2032_v33  ;;  %v4821_v55 = vpop.f32.mrb[58].mxu1  ;;  %v3970_v33 = vld [vmem:[%s6207_s5] ss:$0 sm:$0xff] }
 0xce1   :  { %v2159_v56 = vpop.f32.mrb[59].mxu1  ;;  %v2602_v53 = vld [vmem:[%s6208_s6] sm:$0x1] }
 0xce2   :  { %v2171_v57 = vadd.f32 %v2159_v56, %v2033_v37  ;;  %v5195_v55 = vld [vmem:[%s6209_s7 + $0x20] sm:$0xff]   ;;  %v5197_v56 = vld [vmem:[%s6209_s7 + $0x28] sm:$0xff]  }
 0xcfe   :  { %v4840_v59 = vpop.f32.mrb[60].mxu1 }
 0xcff   :  { %v2221_v60 = vpop.f32.mrb[61].mxu1  ;;  %v2236_v1 = vpack.c.bf16 %v4840_v59, %v4840_v59  ;;  %v5199_v59 = vld [vmem:[%s6209_s7 + $0x30] sm:$0xff]  }
 0xd00   :  { %v4841_v62 = vpop.f32.mrb[62].mxu1 }
 0xd01   :  { %v2224_v63 = vpop.f32.mrb[63].mxu1 }
 0xd02   :  { %v2235_v35 = vpack.c.bf16 %v2224_v63, %v2221_v60  ;;  %v5200_v60 = vld [vmem:[%s6209_s7 + $0x38] sm:$0xff]  }
 0xd04   :  { %4846 = vmatprep.mubr.msk.bf16.mxu0 %vm534_vm0, %v2235_v35 }
 0xd05   :  { %4847 = vmatmul.mubr.msk.bf16.vlgmr.msra.gmra.mrb[76].mxu0 %vm534_vm0, %v2236_v1 }
 0xd06   :  { %4851 = vmatpush3.bf16.msra.mxu0 %v5415_v47  ;;  %4866 = vmatprep.mubr.bf16.mxu0 %v5187_v0 }
 0xd07   :  { %4852 = vmatprep.subr.bf16.mxu0 %v5423_v58 }
 0xd0a   :  { %4853 = vmatpush3.bf16.msra.mxu0 %v5423_v58 }
 0xd0b   :  { %4854 = vmatprep.subr.bf16.mxu0 %v5431_v5 }
 0xd0e   :  { %4855 = vmatpush3.bf16.msra.mxu0 %v5431_v5 }
 0xd0f   :  { %4856 = vmatprep.subr.bf16.mxu0 %v5439_v16 }
 0xd12   :  { %4857 = vmatpush3.bf16.msra.mxu0 %v5439_v16 }
 0xd13   :  { %4858 = vmatprep.subr.bf16.mxu0 %v5447_v27 }
 0xd16   :  { %4859 = vmatpush3.bf16.msra.mxu0 %v5447_v27 }
 0xd17   :  { %4860 = vmatprep.subr.bf16.mxu0 %v5455_v39 }
 0xd1a   :  { %4861 = vmatpush3.bf16.msra.mxu0 %v5455_v39 }
 0xd1b   :  { %4862 = vmatprep.subr.bf16.mxu0 %v5463_v51 }
 0xd1e   :  { %4863 = vmatpush3.bf16.msra.mxu0 %v5463_v51 }
 0xd1f   :  { %4864 = vmatprep.subr.bf16.mxu0 %v5471_v61 }
 0xd22   :  { %4865 = vmatpush3.bf16.msra.mxu0 %v5471_v61 }
 0xd25   :  { %4867 = vmatmul.mubr.bf16.vlgmr.msra.gmra.mrb[80].mxu0 %v5188_v2 }
 0xdd8   :  { %v4848_v3 = vpop.f32.mrb[76].mxu0 }
 0xdd9   :  { %v2310_v4 = vadd.f32 %v4848_v3, %v2172_v52  ;;  %v2294_v6 = vpop.f32.mrb[77].mxu0 }
 0xdda   :  { %v2308_v7 = vadd.f32 %v2294_v6, %v2170_v54  ;;  %v4849_v8 = vpop.f32.mrb[78].mxu0  ;;  %v3972_v54 = vld [vmem:[%s6208_s6 + $0x1] sm:$0x1] }
 0xddb   :  { %v2297_v9 = vpop.f32.mrb[79].mxu0  ;;  %v3992_v8 = vld [vmem:[%s6208_s6 + $0x2] sm:$0x1] }
 0xddc   :  { %v2309_v10 = vadd.f32 %v2297_v9, %v2171_v57  ;;  %v5198_v57 = vld [vmem:[%s6209_s7 + $0x18] sm:$0xff]   ;;  %v4007_v9 = vld [vmem:[%s6208_s6 + $0x3] sm:$0x1] }
 0xdf8   :  { %v4868_v11 = vpop.f32.mrb[80].mxu0 }
 0xdf9   :  { %v2359_v12 = vpop.f32.mrb[81].mxu0  ;;  %v2374_v18 = vpack.c.bf16 %v4868_v11, %v4868_v11  ;;  %v5202_v11 = vld [vmem:[%s6209_s7 + $0x48] sm:$0xff]  }
 0xdfa   :  { %v4869_v13 = vpop.f32.mrb[82].mxu0 }
 0xdfb   :  { %v2362_v14 = vpop.f32.mrb[83].mxu0  ;;  %v5204_v13 = vld [vmem:[%s6209_s7 + $0x60] sm:$0xff]  }
 0xdfc   :  { %v2373_v15 = vpack.c.bf16 %v2362_v14, %v2359_v12  ;;  %v5203_v12 = vld [vmem:[%s6209_s7 + $0x50] sm:$0xff]   ;;  %v5205_v14 = vld [vmem:[%s6209_s7 + $0x58] sm:$0xff]  }
 0xdfe   :  { %4874 = vmatprep.mubr.msk.bf16.mxu1 %vm534_vm0, %v2373_v15  ;;  %v5206_v15 = vld [vmem:[%s6209_s7 + $0x68] sm:$0xff]  }
 0xdff   :  { %4875 = vmatmul.mubr.msk.bf16.vlgmr.msra.gmra.mrb[64].mxu1 %vm534_vm0, %v2374_v18  ;;  %v5208_v18 = vld [vmem:[%s6209_s7 + $0x78] sm:$0xff]  }
 0xe00   :  { %4879 = vmatpush3.bf16.msra.mxu1 %v5415_v47  ;;  %4894 = vmatprep.mubr.bf16.mxu1 %v5189_v17  ;;  %v5190_v47 = vld [vmem:[%s6205_s3 + $0xbc] ss:$0 sps:$4 sm:$0x11]   ;;  %v5207_v17 = vld [vmem:[%s6209_s7 + $0x70] sm:$0xff]  }
 0xe01   :  { %4880 = vmatprep.subr.bf16.mxu1 %v5423_v58 }
 0xe04   :  { %4881 = vmatpush3.bf16.msra.mxu1 %v5423_v58  ;;  %v5191_v58 = vld [vmem:[%s6206_s4 + $0xf0] sm:$0xff]  }
 0xe05   :  { %4882 = vmatprep.subr.bf16.mxu1 %v5431_v5  ;;  %4898 = vmatprep.subr.bf16.mxu0 %v5191_v58 }
 0xe06   :  { %4899 = vmatpush3.bf16.msra.mxu0 %v5191_v58 }
 0xe08   :  { %4883 = vmatpush3.bf16.msra.mxu1 %v5431_v5  ;;  %v5192_v5 = vld [vmem:[%s6206_s4 + $0xf8] sm:$0xff]  }
 0xe09   :  { %4884 = vmatprep.subr.bf16.mxu1 %v5439_v16  ;;  %4900 = vmatprep.subr.bf16.mxu0 %v5192_v5 }
 0xe0a   :  { %4901 = vmatpush3.bf16.msra.mxu0 %v5192_v5 }
 0xe0b   :  { %4906 = vmatprep.subr.bf16.mxu0 %v5253_v28 }
 0xe0c   :  { %4885 = vmatpush3.bf16.msra.mxu1 %v5439_v16 }
 0xe0d   :  { %4886 = vmatprep.subr.bf16.mxu1 %v5447_v27 }
 0xe10   :  { %4887 = vmatpush3.bf16.msra.mxu1 %v5447_v27 }
 0xe11   :  { %4888 = vmatprep.subr.bf16.mxu1 %v5455_v39 }
 0xe14   :  { %4889 = vmatpush3.bf16.msra.mxu1 %v5455_v39 }
 0xe15   :  { %4890 = vmatprep.subr.bf16.mxu1 %v5463_v51 }
 0xe18   :  { %4891 = vmatpush3.bf16.msra.mxu1 %v5463_v51 }
 0xe19   :  { %4892 = vmatprep.subr.bf16.mxu1 %v5471_v61 }
 0xe1c   :  { %4893 = vmatpush3.bf16.msra.mxu1 %v5471_v61 }
 0xe1d   :  { %4934 = vmatprep.subr.bf16.mxu1 %v5253_v28 }
 0xe1f   :  { %4895 = vmatmul.mubr.bf16.vlgmr.msra.gmra.mrb[68].mxu1 %v5190_v47 }
 0xe20   :  { %4942 = vmatprep.mubr.msk.bf16.mxu1 %vm5254_vm1, %v5253_v28  ;;  %4935 = vmatpush3.bf16.msra.mxu1 %v5193_v29 }
 0xe21   :  { %4936 = vmatprep.subr.bf16.mxu1 %v5253_v28 }
 0xe24   :  { %4937 = vmatpush3.bf16.msra.mxu1 %v5194_v30  ;;  %v5209_v30 = vld [vmem:[%s6209_s7 + $0x80] sm:$0xff]  }
 0xe25   :  { %4938 = vmatprep.subr.bf16.mxu1 %v5253_v28 }
 0xe28   :  { %4939 = vmatpush3.bf16.msra.mxu1 %v5196_v31 }
 0xe29   :  { %4940 = vmatprep.subr.bf16.mxu1 %v5253_v28 }
 0xe2c   :  { %4941 = vmatpush3.bf16.msra.mxu1 %v5198_v57 }
 0xe2d   :  { %4954 = vmatprep.subr.bf16.mxu1 %v5253_v28 }
 0xed2   :  { %v4876_v16 = vpop.f32.mrb[64].mxu1 }
 0xed3   :  { %v2448_v27 = vadd.f32 %v4876_v16, %v2310_v4  ;;  %v2432_v39 = vpop.f32.mrb[65].mxu1 }
 0xed4   :  { %v2446_v51 = vadd.f32 %v2432_v39, %v2308_v7  ;;  %v4877_v19 = vpop.f32.mrb[66].mxu1 }
 0xed5   :  { %v2435_v20 = vpop.f32.mrb[67].mxu1 }
 0xed6   :  { %v2447_v61 = vadd.f32 %v2435_v20, %v2309_v10  ;;  %v5201_v10 = vld [vmem:[%s6209_s7 + $0x40] sm:$0xff]  }
 0xef2   :  { %v4896_v21 = vpop.f32.mrb[68].mxu1 }
 0xef3   :  { %v2497_v22 = vpop.f32.mrb[69].mxu1  ;;  %v2512_v26 = vpack.c.bf16 %v4896_v21, %v4896_v21 }
 0xef4   :  { %v4897_v23 = vpop.f32.mrb[70].mxu1 }
 0xef5   :  { %v2500_v24 = vpop.f32.mrb[71].mxu1 }
 0xef6   :  { %v2511_v25 = vpack.c.bf16 %v2500_v24, %v2497_v22 }
 0xef8   :  { %4902 = vmatprep.mubr.msk.bf16.mxu0 %vm534_vm0, %v2511_v25 }
 0xef9   :  { %4903 = vmatmul.mubr.msk.bf16.vlgmr.msra.gmra.mrb[84].mxu0 %vm534_vm0, %v2512_v26  ;;  %v4022_v26 = vld [vmem:[%s6208_s6 + $0x4] sm:$0x1] }
 0xefa   :  { %4910 = vmatprep.mubr.msk.bf16.mxu0 %vm5254_vm1, %v5253_v28 }
 0xfcc   :  { %v4904_v32 = vpop.f32.mrb[84].mxu0 }
 0xfcd   :  { %v2586_v34 = vadd.f32 %v4904_v32, %v2448_v27  ;;  %v2570_v36 = vpop.f32.mrb[85].mxu0 }
 0xfce   :  { %v2584_v37 = vadd.f32 %v2570_v36, %v2446_v51  ;;  %v4905_v38 = vpop.f32.mrb[86].mxu0  ;;  %v4037_v36 = vld [vmem:[%s6208_s6 + $0x5] sm:$0x1] }
 0xfcf   :  { %v2596_v40 = vadd.f32 %v3970_v33, %v2586_v34  ;;  %v2573_v41 = vpop.f32.mrb[87].mxu0  ;;  %v5210_v34 = vld [vmem:[%s6209_s7 + $0x88] sm:$0xff]   ;;  %v5212_v38 = vld [vmem:[%s6209_s7 + $0xa0] sm:$0xff]  }
 0xfd0   :  { %v2594_v42 = vadd.f32 %v3970_v33, %v2584_v37  ;;  %v2585_v43 = vadd.f32 %v2573_v41, %v2447_v61  ;;  %v5211_v37 = vld [vmem:[%s6209_s7 + $0x90] sm:$0xff]   ;;  %v5214_v41 = vld [vmem:[%s6209_s7 + $0xa8] sm:$0xff]  }
 0xfd1   :  { %v2599_v45 = vmax.f32 %v2596_v40, 0.0  ;;  %v5213_v40 = vld [vmem:[%s6209_s7 + $0x98] sm:$0xff]  }
 0xfd2   :  { %v2595_v44 = vadd.f32 %v3970_v33, %v2585_v43  ;;  %v2597_v46 = vmax.f32 %v2594_v42, 0.0  ;;  %v5215_v42 = vld [vmem:[%s6209_s7 + $0xb0] sm:$0xff]   ;;  %v5216_v43 = vld [vmem:[%s6209_s7 + $0xb8] sm:$0xff]  }
 0xfd3   :  { %v2601_v50 = vpack.c.bf16 %v2599_v45, %v2599_v45 }
 0xfd4   :  { %v2598_v48 = vmax.f32 %v2595_v44, 0.0 }
 0xfd5   :  { %v5944_v52 = vsel %vm2607_vm2, %v2601_v50, 0 }
 0xfd6   :  { %v5940_v49 = vpack.c.bf16 %v2598_v48, %v2597_v46 }
 0xfd8   :  { %4907 = vmatpush3.bf16.msra.mxu0 %v5940_v49 }
 0xfd9   :  { %4908 = vmatprep.subr.bf16.mxu0 %v5253_v28 }
 0xfdc   :  { %4909 = vmatpush3.bf16.msra.mxu0 %v5944_v52 }
 0xfdd   :  { %4914 = vmatprep.subr.bf16.mxu0 %v5253_v28 }
 0xfdf   :  { %4911 = vmatmul.mubr.msk.bf16.vlgmr.msra.gmra.mrb[88].mxu0 %vm2603_vm3, %v2602_v53 }
 0xfe0   :  { %4915 = vmatpush3.bf16.msra.mxu0 %v5940_v49  ;;  %4918 = vmatprep.mubr.msk.bf16.mxu0 %vm5254_vm1, %v5253_v28 }
 0xfe1   :  { %4916 = vmatprep.subr.bf16.mxu0 %v5253_v28 }
 0xfe4   :  { %4917 = vmatpush3.bf16.msra.mxu0 %v5944_v52 }
 0xfe5   :  { %4922 = vmatprep.subr.bf16.mxu0 %v5253_v28 }
 0xfe7   :  { %4919 = vmatmul.mubr.msk.bf16.vlgmr.msra.gmra.mrb[92].mxu0 %vm2603_vm3, %v3972_v54 }
 0xfe8   :  { %4923 = vmatpush3.bf16.msra.mxu0 %v5195_v55  ;;  %4930 = vmatprep.mubr.msk.bf16.mxu0 %vm5254_vm1, %v5253_v28 }
 0xfe9   :  { %4924 = vmatprep.subr.bf16.mxu0 %v5253_v28 }
 0xfec   :  { %4925 = vmatpush3.bf16.msra.mxu0 %v5197_v56 }
 0xfed   :  { %4926 = vmatprep.subr.bf16.mxu0 %v5253_v28 }
 0xff0   :  { %4927 = vmatpush3.bf16.msra.mxu0 %v5199_v59 }
 0xff1   :  { %4928 = vmatprep.subr.bf16.mxu0 %v5253_v28 }
 0xff4   :  { %4929 = vmatpush3.bf16.msra.mxu0 %v5200_v60 }
 0xff5   :  { %4946 = vmatprep.subr.bf16.mxu0 %v5253_v28 }
0x10b2   :  { %v2645_v62 = vpop.f32.mrb[88].mxu0 }
0x10b3   :  { %v2651_v63 = vpack.c.bf16 %v2645_v62, %v2645_v62  ;;  %v4912_v35 = vpop.f32.mrb[89].mxu0 }
0x10b4   :  { %v2648_v0 = vpop.f32.mrb[90].mxu0 }
0x10b5   :  { %v4913_v1 = vpop.f32.mrb[91].mxu0  ;;  %4943 = vmatmul.mubr.msk.bf16.vlgmr.msra.gmra.mrb[72].mxu1 %vm2739_vm4, %v2651_v63 }
0x10b6   :  { %4962 = vmatprep.mubr.msk.bf16.mxu1 %vm5254_vm1, %v5253_v28  ;;  %4955 = vmatpush3.bf16.msra.mxu1 %v5201_v10  ;;  %v4052_v1 = vld [vmem:[%s6208_s6 + $0x6] sm:$0x1]  ;;  %v5219_v10 = vld [vmem:[%s6209_s7 + $0xd0] sm:$0xff]  }
0x10b7   :  { %4956 = vmatprep.subr.bf16.mxu1 %v5253_v28 }
0x10ba   :  { %v2699_v2 = vpop.f32.mrb[92].mxu0  ;;  %4957 = vmatpush3.bf16.msra.mxu1 %v5202_v11  ;;  %v5220_v11 = vld [vmem:[%s6209_s7 + $0xe0] sm:$0xff]  }
0x10bb   :  { %v2705_v3 = vpack.c.bf16 %v2699_v2, %v2699_v2  ;;  %v4920_v4 = vpop.f32.mrb[93].mxu0  ;;  %4958 = vmatprep.subr.bf16.mxu1 %v5253_v28 }
0x10bc   :  { %v2702_v6 = vpop.f32.mrb[94].mxu0 }
0x10bd   :  { %v4921_v7 = vpop.f32.mrb[95].mxu0  ;;  %4931 = vmatmul.mubr.msk.bf16.vlgmr.msra.gmra.mrb[96].mxu0 %vm2739_vm4, %v2705_v3  ;;  %v5217_v3 = vld [vmem:[%s6209_s7 + $0xc0] sm:$0xff]  }
0x10be   :  { %4947 = vmatpush3.bf16.msra.mxu0 %v5940_v49  ;;  %4950 = vmatprep.mubr.msk.bf16.mxu0 %vm5254_vm1, %v5253_v28 }
0x10bf   :  { %4948 = vmatprep.subr.bf16.mxu0 %v5253_v28  ;;  %4959 = vmatpush3.bf16.msra.mxu1 %v5203_v12  ;;  %v5221_v12 = vld [vmem:[%s6209_s7 + $0xd8] sm:$0xff]  }
0x10c0   :  { %4960 = vmatprep.subr.bf16.mxu1 %v5253_v28 }
0x10c2   :  { %4949 = vmatpush3.bf16.msra.mxu0 %v5944_v52 }
0x10c3   :  { %4966 = vmatprep.subr.bf16.mxu0 %v5253_v28  ;;  %4961 = vmatpush3.bf16.msra.mxu1 %v5205_v14  ;;  %v5223_v14 = vld [vmem:[%s6209_s7 + $0xf0] sm:$0xff]  }
0x10c4   :  { %4986 = vmatprep.subr.bf16.mxu1 %v5253_v28 }
0x10c5   :  { %4951 = vmatmul.mubr.msk.bf16.vlgmr.msra.gmra.mrb[100].mxu0 %vm2603_vm3, %v3992_v8  ;;  %v5218_v8 = vld [vmem:[%s6209_s7 + $0xc8] sm:$0xff]  }
0x10c6   :  { %4967 = vmatpush3.bf16.msra.mxu0 %v5940_v49  ;;  %4970 = vmatprep.mubr.msk.bf16.mxu0 %vm5254_vm1, %v5253_v28 }
0x10c7   :  { %4968 = vmatprep.subr.bf16.mxu0 %v5253_v28 }
0x10ca   :  { %4969 = vmatpush3.bf16.msra.mxu0 %v5944_v52 }
0x10cb   :  { %4974 = vmatprep.subr.bf16.mxu0 %v5253_v28 }
0x10cd   :  { %4971 = vmatmul.mubr.msk.bf16.vlgmr.msra.gmra.mrb[104].mxu0 %vm2603_vm3, %v4007_v9  ;;  %v4067_v9 = vld [vmem:[%s6208_s6 + $0x7] sm:$0x1] }
0x10ce   :  { %4982 = vmatprep.mubr.msk.bf16.mxu0 %vm5254_vm1, %v5253_v28  ;;  %4975 = vmatpush3.bf16.msra.mxu0 %v5204_v13  ;;  %v5222_v13 = vld [vmem:[%s6209_s7 + $0xe8] sm:$0xff]  }
0x10cf   :  { %4976 = vmatprep.subr.bf16.mxu0 %v5253_v28 }
0x10d2   :  { %4977 = vmatpush3.bf16.msra.mxu0 %v5206_v15  ;;  %v5224_v15 = vld [vmem:[%s6209_s7 + $0xf8] sm:$0xff]  }
0x10d3   :  { %4978 = vmatprep.subr.bf16.mxu0 %v5253_v28 }
0x10d6   :  { %4979 = vmatpush3.bf16.msra.mxu0 %v5207_v17 }
0x10d7   :  { %4980 = vmatprep.subr.bf16.mxu0 %v5253_v28 }
0x10da   :  { %4981 = vmatpush3.bf16.msra.mxu0 %v5208_v18 }
0x10db   :  { %5006 = vmatprep.subr.bf16.mxu0 %v5253_v28 }
0x1188   :  { %v2844_v47 = vpop.f32.mrb[72].mxu1 }
0x1189   :  { %v4944_v58 = vpop.f32.mrb[73].mxu1 }
0x118a   :  { %v2847_v5 = vpop.f32.mrb[74].mxu1 }
0x118b   :  { %v4945_v16 = vpop.f32.mrb[75].mxu1 }
0x1190   :  { %v2777_v27 = vpop.f32.mrb[96].mxu0 }
0x1191   :  { %v2845_v39 = vadd.f32 %v2844_v47, %v2777_v27  ;;  %v4932_v51 = vpop.f32.mrb[97].mxu0 }
0x1192   :  { %v2780_v19 = vpop.f32.mrb[98].mxu0 }
0x1193   :  { %v4933_v20 = vpop.f32.mrb[99].mxu0 }
0x1198   :  { %v2889_v61 = vpop.f32.mrb[100].mxu0 }
0x1199   :  { %v2895_v21 = vpack.c.bf16 %v2889_v61, %v2889_v61  ;;  %v4952_v22 = vpop.f32.mrb[101].mxu0 }
0x119a   :  { %v2892_v23 = vpop.f32.mrb[102].mxu0 }
0x119b   :  { %v4953_v24 = vpop.f32.mrb[103].mxu0  ;;  %4963 = vmatmul.mubr.msk.bf16.vlgmr.msra.gmra.mrb[76].mxu1 %vm2739_vm4, %v2895_v21 }
0x119c   :  { %4987 = vmatpush3.bf16.msra.mxu1 %v5940_v49  ;;  %4990 = vmatprep.mubr.msk.bf16.mxu1 %vm5254_vm1, %v5253_v28 }
0x119d   :  { %4988 = vmatprep.subr.bf16.mxu1 %v5253_v28 }
0x11a0   :  { %4989 = vmatpush3.bf16.msra.mxu1 %v5944_v52  ;;  %v3012_v25 = vpop.f32.mrb[104].mxu0 }
0x11a1   :  { %v3018_v29 = vpack.c.bf16 %v3012_v25, %v3012_v25  ;;  %4994 = vmatprep.subr.bf16.mxu1 %v5253_v28  ;;  %v4972_v31 = vpop.f32.mrb[105].mxu0  ;;  %v4082_v25 = vld [vmem:[%s6208_s6 + $0x8] sm:$0x1] }
0x11a2   :  { %v3015_v32 = vpop.f32.mrb[106].mxu0 }
0x11a3   :  { %4983 = vmatmul.mubr.msk.bf16.vlgmr.msra.gmra.mrb[108].mxu0 %vm2739_vm4, %v3018_v29  ;;  %4991 = vmatmul.mubr.msk.bf16.vlgmr.msra.gmra.mrb[80].mxu1 %vm2603_vm3, %v4022_v26  ;;  %v4973_v33 = vpop.f32.mrb[107].mxu0  ;;  %v5225_v26 = vld [vmem:[%s6209_s7 + $0x100] sm:$0xff]   ;;  %v5227_v32 = vld [vmem:[%s6209_s7 + $0x110] sm:$0xff]  }
0x11a4   :  { %5007 = vmatpush3.bf16.msra.mxu0 %v5940_v49  ;;  %5010 = vmatprep.mubr.msk.bf16.mxu0 %vm5254_vm1, %v5253_v28  ;;  %v5228_v33 = vld [vmem:[%s6209_s7 + $0x118] sm:$0xff]  }
0x11a5   :  { %5008 = vmatprep.subr.bf16.mxu0 %v5253_v28  ;;  %4995 = vmatpush3.bf16.msra.mxu1 %v5209_v30 }
0x11a6   :  { %4996 = vmatprep.subr.bf16.mxu1 %v5253_v28  ;;  %5002 = vmatprep.mubr.msk.bf16.mxu1 %vm5254_vm1, %v5253_v28 }
0x11a8   :  { %5009 = vmatpush3.bf16.msra.mxu0 %v5944_v52 }
0x11a9   :  { %4997 = vmatpush3.bf16.msra.mxu1 %v5210_v34  ;;  %5014 = vmatprep.subr.bf16.mxu0 %v5253_v28 }
0x11aa   :  { %4998 = vmatprep.subr.bf16.mxu1 %v5253_v28 }
0x11ab   :  { %5011 = vmatmul.mubr.msk.bf16.vlgmr.msra.gmra.mrb[112].mxu0 %vm2603_vm3, %v4037_v36 }
0x11ac   :  { %5022 = vmatprep.mubr.msk.bf16.mxu0 %vm5254_vm1, %v5253_v28  ;;  %5015 = vmatpush3.bf16.msra.mxu0 %v5212_v38 }
0x11ad   :  { %4999 = vmatpush3.bf16.msra.mxu1 %v5211_v37  ;;  %5016 = vmatprep.subr.bf16.mxu0 %v5253_v28 }
0x11ae   :  { %5000 = vmatprep.subr.bf16.mxu1 %v5253_v28 }
0x11b0   :  { %5017 = vmatpush3.bf16.msra.mxu0 %v5214_v41 }
0x11b1   :  { %5001 = vmatpush3.bf16.msra.mxu1 %v5213_v40  ;;  %5018 = vmatprep.subr.bf16.mxu0 %v5253_v28 }
0x11b2   :  { %5026 = vmatprep.subr.bf16.mxu1 %v5253_v28 }
0x11b4   :  { %5019 = vmatpush3.bf16.msra.mxu0 %v5215_v42 }
0x11b5   :  { %5020 = vmatprep.subr.bf16.mxu0 %v5253_v28 }
0x11b8   :  { %5021 = vmatpush3.bf16.msra.mxu0 %v5216_v43 }
0x11b9   :  { %5046 = vmatprep.subr.bf16.mxu0 %v5253_v28 }
0x126e   :  { %v2966_v44 = vpop.f32.mrb[76].mxu1 }
0x126f   :  { %v2972_v45 = vadd.f32 %v2966_v44, %v2845_v39  ;;  %v4964_v46 = vpop.f32.mrb[77].mxu1 }
0x1270   :  { %v2969_v48 = vpop.f32.mrb[78].mxu1 }
0x1271   :  { %v4965_v50 = vpop.f32.mrb[79].mxu1 }
0x1276   :  { %v3089_v53 = vpop.f32.mrb[108].mxu0  ;;  %v3135_v54 = vpop.f32.mrb[80].mxu1 }
0x1277   :  { %v3095_v55 = vadd.f32 %v3089_v53, %v2972_v45  ;;  %v3141_v56 = vpack.c.bf16 %v3135_v54, %v3135_v54  ;;  %v4992_v57 = vpop.f32.mrb[81].mxu1  ;;  %v4984_v59 = vpop.f32.mrb[109].mxu0 }
0x1278   :  { %v3138_v60 = vpop.f32.mrb[82].mxu1  ;;  %v3092_v62 = vpop.f32.mrb[110].mxu0 }
0x1279   :  { %v4993_v63 = vpop.f32.mrb[83].mxu1  ;;  %5003 = vmatmul.mubr.msk.bf16.vlgmr.msra.gmra.mrb[84].mxu1 %vm2739_vm4, %v3141_v56  ;;  %v4985_v35 = vpop.f32.mrb[111].mxu0 }
0x127a   :  { %5027 = vmatpush3.bf16.msra.mxu1 %v5940_v49  ;;  %5030 = vmatprep.mubr.msk.bf16.mxu1 %vm5254_vm1, %v5253_v28 }
0x127b   :  { %5028 = vmatprep.subr.bf16.mxu1 %v5253_v28 }
0x127e   :  { %5029 = vmatpush3.bf16.msra.mxu1 %v5944_v52  ;;  %v3258_v0 = vpop.f32.mrb[112].mxu0 }
0x127f   :  { %v3264_v2 = vpack.c.bf16 %v3258_v0, %v3258_v0  ;;  %5034 = vmatprep.subr.bf16.mxu1 %v5253_v28  ;;  %v5012_v4 = vpop.f32.mrb[113].mxu0 }
0x1280   :  { %v3261_v6 = vpop.f32.mrb[114].mxu0 }
0x1281   :  { %5023 = vmatmul.mubr.msk.bf16.vlgmr.msra.gmra.mrb[116].mxu0 %vm2739_vm4, %v3264_v2  ;;  %5031 = vmatmul.mubr.msk.bf16.vlgmr.msra.gmra.mrb[88].mxu1 %vm2603_vm3, %v4052_v1  ;;  %v5013_v7 = vpop.f32.mrb[115].mxu0 }
0x1282   :  { %5047 = vmatpush3.bf16.msra.mxu0 %v5940_v49  ;;  %5050 = vmatprep.mubr.msk.bf16.mxu0 %vm5254_vm1, %v5253_v28 }
0x1283   :  { %5048 = vmatprep.subr.bf16.mxu0 %v5253_v28  ;;  %5035 = vmatpush3.bf16.msra.mxu1 %v5217_v3 }
0x1284   :  { %5036 = vmatprep.subr.bf16.mxu1 %v5253_v28  ;;  %5042 = vmatprep.mubr.msk.bf16.mxu1 %vm5254_vm1, %v5253_v28 }
0x1286   :  { %5049 = vmatpush3.bf16.msra.mxu0 %v5944_v52 }
0x1287   :  { %5037 = vmatpush3.bf16.msra.mxu1 %v5218_v8  ;;  %5054 = vmatprep.subr.bf16.mxu0 %v5253_v28 }
0x1288   :  { %5038 = vmatprep.subr.bf16.mxu1 %v5253_v28 }
0x1289   :  { %5051 = vmatmul.mubr.msk.bf16.vlgmr.msra.gmra.mrb[120].mxu0 %vm2603_vm3, %v4067_v9 }
0x128a   :  { %5062 = vmatprep.mubr.msk.bf16.mxu0 %vm5254_vm1, %v5253_v28  ;;  %5055 = vmatpush3.bf16.msra.mxu0 %v5220_v11 }
0x128b   :  { %5039 = vmatpush3.bf16.msra.mxu1 %v5219_v10  ;;  %5056 = vmatprep.subr.bf16.mxu0 %v5253_v28 }
0x128c   :  { %5040 = vmatprep.subr.bf16.mxu1 %v5253_v28 }
0x128e   :  { %5057 = vmatpush3.bf16.msra.mxu0 %v5222_v13 }
0x128f   :  { %5041 = vmatpush3.bf16.msra.mxu1 %v5221_v12  ;;  %5058 = vmatprep.subr.bf16.mxu0 %v5253_v28 }
0x1290   :  { %5066 = vmatprep.subr.bf16.mxu1 %v5253_v28 }
0x1292   :  { %5059 = vmatpush3.bf16.msra.mxu0 %v5223_v14 }
0x1293   :  { %5060 = vmatprep.subr.bf16.mxu0 %v5253_v28 }
0x1296   :  { %5061 = vmatpush3.bf16.msra.mxu0 %v5224_v15 }
0x134c   :  { %v3212_v17 = vpop.f32.mrb[84].mxu1 }
0x134d   :  { %v3218_v18 = vadd.f32 %v3212_v17, %v3095_v55  ;;  %v5004_v47 = vpop.f32.mrb[85].mxu1  ;;  %v4097_v55 = vld [vmem:[%s6210_s8] ss:$0 sm:$0xff] }
0x134e   :  { %v3215_v58 = vpop.f32.mrb[86].mxu1 }
0x134f   :  { %v5005_v5 = vpop.f32.mrb[87].mxu1 }
0x1354   :  { %v3335_v16 = vpop.f32.mrb[116].mxu0  ;;  %v3381_v27 = vpop.f32.mrb[88].mxu1 }
0x1355   :  { %v3341_v39 = vadd.f32 %v3335_v16, %v3218_v18  ;;  %v3387_v51 = vpack.c.bf16 %v3381_v27, %v3381_v27  ;;  %v5032_v19 = vpop.f32.mrb[89].mxu1  ;;  %v5024_v20 = vpop.f32.mrb[117].mxu0 }
0x1356   :  { %v3384_v61 = vpop.f32.mrb[90].mxu1  ;;  %v3338_v21 = vpop.f32.mrb[118].mxu0 }
0x1357   :  { %v5033_v22 = vpop.f32.mrb[91].mxu1  ;;  %5043 = vmatmul.mubr.msk.bf16.vlgmr.msra.gmra.mrb[92].mxu1 %vm2739_vm4, %v3387_v51  ;;  %v5025_v23 = vpop.f32.mrb[119].mxu0 }
0x1358   :  { %5067 = vmatpush3.bf16.msra.mxu1 %v5940_v49  ;;  %5070 = vmatprep.mubr.msk.bf16.mxu1 %vm5254_vm1, %v5253_v28 }
0x1359   :  { %5068 = vmatprep.subr.bf16.mxu1 %v5253_v28 }
0x135c   :  { %5069 = vmatpush3.bf16.msra.mxu1 %v5944_v52  ;;  %v3504_v24 = vpop.f32.mrb[120].mxu0  ;;  %v5226_v52 = vld [vmem:[%s6209_s7 + $0x108] sm:$0xff]  }
0x135d   :  { %v3510_v29 = vpack.c.bf16 %v3504_v24, %v3504_v24  ;;  %5074 = vmatprep.subr.bf16.mxu1 %v5253_v28  ;;  %v5052_v49 = vpop.f32.mrb[121].mxu0 }
0x135e   :  { %v3507_v30 = vpop.f32.mrb[122].mxu0 }
0x135f   :  { %5063 = vmatmul.mubr.msk.bf16.vlgmr.msra.gmra.mrb[124].mxu0 %vm2739_vm4, %v3510_v29  ;;  %5071 = vmatmul.mubr.msk.bf16.vlgmr.msra.gmra.mrb[96].mxu1 %vm2603_vm3, %v4082_v25  ;;  %v5053_v31 = vpop.f32.mrb[123].mxu0 }
0x1360   :  { %5075 = vmatpush3.bf16.msra.mxu1 %v5225_v26  ;;  %5082 = vmatprep.mubr.msk.bf16.mxu1 %vm5254_vm1, %v5253_v28 }
0x1361   :  { %5076 = vmatprep.subr.bf16.mxu1 %v5253_v28 }
0x1364   :  { %5077 = vmatpush3.bf16.msra.mxu1 %v5226_v52 }
0x1365   :  { %5078 = vmatprep.subr.bf16.mxu1 %v5253_v28 }
0x1368   :  { %5079 = vmatpush3.bf16.msra.mxu1 %v5227_v32 }
0x1369   :  { %5080 = vmatprep.subr.bf16.mxu1 %v5253_v28 }
0x136c   :  { %5081 = vmatpush3.bf16.msra.mxu1 %v5228_v33 }
0x142a   :  { %v3458_v34 = vpop.f32.mrb[92].mxu1 }
0x142b   :  { %v3464_v36 = vadd.f32 %v3458_v34, %v3341_v39  ;;  %v5044_v37 = vpop.f32.mrb[93].mxu1 }
0x142c   :  { %v3461_v38 = vpop.f32.mrb[94].mxu1 }
0x142d   :  { %v5045_v40 = vpop.f32.mrb[95].mxu1 }
0x1432   :  { %v3581_v41 = vpop.f32.mrb[124].mxu0  ;;  %v3627_v42 = vpop.f32.mrb[96].mxu1 }
0x1433   :  { %v3587_v43 = vadd.f32 %v3581_v41, %v3464_v36  ;;  %v3633_v44 = vpack.c.bf16 %v3627_v42, %v3627_v42  ;;  %v5072_v45 = vpop.f32.mrb[97].mxu1  ;;  %v5064_v46 = vpop.f32.mrb[125].mxu0 }
0x1434   :  { %v3630_v48 = vpop.f32.mrb[98].mxu1  ;;  %v3584_v50 = vpop.f32.mrb[126].mxu0 }
0x1435   :  { %v5073_v53 = vpop.f32.mrb[99].mxu1  ;;  %5083 = vmatmul.mubr.msk.bf16.vlgmr.msra.gmra.mrb[100].mxu1 %vm2739_vm4, %v3633_v44  ;;  %v5065_v28 = vpop.f32.mrb[127].mxu0 }
0x1508   :  { %v3704_v54 = vpop.f32.mrb[100].mxu1 }
0x1509   :  { %v3710_v56 = vadd.f32 %v3704_v54, %v3587_v43  ;;  %v5084_v57 = vpop.f32.mrb[101].mxu1 }
0x150a   :  { %v3707_v59 = vpop.f32.mrb[102].mxu1 }
0x150b   :  { %v3718_v60 = vadd.f32 %v4097_v55, %v3710_v56  ;;  %v5085_v62 = vpop.f32.mrb[103].mxu1 }
0x150d   :  { %v3719_v63 = vmax.f32 %v3718_v60, 0.0 }
0x150f   :  { %3721 = vst.msk [vmem:[#allocation2] sm:$0x3] %vm3720_vm5, %v3719_v63 }
0x1510   :  { %5240 = shalt.err (!%p5237_p4)
}
0x1511   :  { %s5241_s28 = scalar_lea.hbm %s6211_s9, 32 }
0x1512   :  { %p5242_p5 = scmp.ne.s32.totalorder %s6211_s9, %s5241_s28  ;;  %p5245_p6 = scmp.lt.u32.totalorder %s5241_s28, %s6211_s9 }
0x1514   :  { %p5247_p7 = pnand %p5245_p6, %p5242_p5 }
0x1516   :  { %5250 = shalt.err (!%p5247_p7)
}
0x1517   :  { %3731 = dma.vmem_to_hbm [thread:$0]  %s3729_s25, 32, %s6211_s9, [#allocation3]  }
0x1518   :  { %5251 = dma.done.wait [#allocation3], 32  }
0x1519   :  { %5252 = vsyncadd [#allocation3], 4294967264 }
0x151a   :  { %3735 = vsyncpa [#allocation3], 1 }

</bundles_post_ra>
